<compile_context>
chip_gen: v7x
topology: tpu7x:2x2x1
jax: 0.10.0
libtpu: 0.0.40
codegen_flags: <defaults>
</compile_context>

<pallas_src>
import jax
import jax.numpy as jnp
from jax import lax
from jax.experimental import pallas as pl
from jax.experimental.pallas import tpu as pltpu

VOCAB = 128
HIDDEN = 32
NUM_LAYERS = 2
NUM_HEADS = 4
HEAD_DIM = HIDDEN // NUM_HEADS
INTERMEDIATE = 64
SEQ = 8
EPS = 1e-6
ROPE_THETA = 10000.0


# ---------------------------- fused Pallas kernel ----------------------------

def _fused_decoder_kernel(x0_ref, cos_ref, sin_ref, ln1_ref, wqkv_ref, wo_ref,
                          ln2_ref, wgu_ref, wd_ref, fnorm_ref, o_ref, x_ref):
    """One grid step == one decoder layer; x_ref (VMEM scratch, f32) carries the
    residual stream across layers."""
    layer = pl.program_id(0)
    s, hidden = x_ref.shape

    # ---- residual-stream init from the (pre-gathered) embeddings, layer 0 only.
    # NOTE: x_ref is read below only AFTER this write (do not reorder).
    @pl.when(layer == 0)
    def _init():
        x_ref[...] = x0_ref[...]

    def rmsnorm(x, w):  # f32 throughout
        return x * lax.rsqrt(jnp.mean(x * x, axis=-1, keepdims=True) + EPS) * w

    x = x_ref[...]                                                        # [S, H] f32

    # ---------------- attention block ----------------
    h = rmsnorm(x, ln1_ref[0]).astype(jnp.bfloat16)                       # [S, H] bf16
    qkv = jnp.dot(h, wqkv_ref[0], preferred_element_type=jnp.float32)     # [S, 3H] f32
    q = qkv[:, :hidden]
    k = qkv[:, hidden:2 * hidden]
    v = qkv[:, 2 * hidden:]

    # RoPE in flat [S, H] layout, no matmul: rotate_half per head via static
    # lane slices (+negate).  At real HEAD_DIM=128 this becomes pltpu.roll.
    cos = cos_ref[...]
    sin = sin_ref[...]

    def rope(t):  # t: [S, H] f32
        parts = []
        for hh in range(NUM_HEADS):
            lo = hh * HEAD_DIM
            mid = lo + HEAD_DIM // 2
            hi = lo + HEAD_DIM
            parts.append(-t[:, mid:hi])
            parts.append(t[:, lo:mid])
        return t * cos + jnp.concatenate(parts, axis=-1) * sin

    q = rope(q)
    k = rope(k)

    # Causal additive mask generated in-kernel (f32, added before any downcast).
    row = lax.broadcasted_iota(jnp.int32, (s, s), 0)
    col = lax.broadcasted_iota(jnp.int32, (s, s), 1)
    mask = jnp.where(col <= row, 0.0, -1e30).astype(jnp.float32)          # [S, S]

    scale = 1.0 / (HEAD_DIM ** 0.5)
    heads = []
    for hh in range(NUM_HEADS):                                           # unrolled (static)
        lo = hh * HEAD_DIM
        hi = lo + HEAD_DIM
        qh = q[:, lo:hi].astype(jnp.bfloat16)
        kh = k[:, lo:hi].astype(jnp.bfloat16)
        vh = v[:, lo:hi].astype(jnp.bfloat16)
        sc = lax.dot_general(qh, kh, (((1,), (1,)), ((), ())),
                             preferred_element_type=jnp.float32) * scale + mask
        m = jnp.max(sc, axis=-1, keepdims=True)                           # f32 softmax
        p = jnp.exp(sc - m)
        p = p * pl.reciprocal(jnp.sum(p, axis=-1, keepdims=True), approx=True)
        heads.append(jnp.dot(p.astype(jnp.bfloat16), vh,
                             preferred_element_type=jnp.float32))
    attn = jnp.concatenate(heads, axis=-1)                                # [S, H] f32
    x = x + jnp.dot(attn.astype(jnp.bfloat16), wo_ref[0],
                    preferred_element_type=jnp.float32)

    # ---------------- SwiGLU MLP block ----------------
    h2 = rmsnorm(x, ln2_ref[0]).astype(jnp.bfloat16)
    gu = jnp.dot(h2, wgu_ref[0], preferred_element_type=jnp.float32)      # [S, 2F] f32
    g = gu[:, :INTERMEDIATE]
    u = gu[:, INTERMEDIATE:]
    mlp = (g * jax.nn.sigmoid(g) * u).astype(jnp.bfloat16)
    x = x + jnp.dot(mlp, wd_ref[0], preferred_element_type=jnp.float32)

    x_ref[...] = x

    # ---- final RMSNorm + output store (last layer only) ----
    @pl.when(layer == pl.num_programs(0) - 1)
    def _finalize():
        o_ref[...] = rmsnorm(x, fnorm_ref[...])


# ---------------------------- glue (plain JAX) ----------------------------

def rope_tables(positions, dim):
    inv_freq = 1.0 / (ROPE_THETA ** (jnp.arange(0, dim, 2, dtype=jnp.float32) / dim))
    freqs = positions.astype(jnp.float32)[:, None] * inv_freq[None, :]
    emb = jnp.concatenate([freqs, freqs], axis=-1)  # [S, D]
    return jnp.cos(emb), jnp.sin(emb)


def init_params(key):
    def nrm(k, shape, scale=0.02):
        return scale * jax.random.normal(k, shape, jnp.float32)

    keys = jax.random.split(key, 1 + NUM_LAYERS)
    params = {
        'embed': nrm(keys[0], (VOCAB, HIDDEN), 1.0),
        'final_norm': jnp.ones((HIDDEN,), jnp.float32),
        'layers': [],
    }
    for li in range(NUM_LAYERS):
        lk = jax.random.split(keys[1 + li], 7)
        params['layers'].append({
            'ln1': jnp.ones((HIDDEN,), jnp.float32),
            'ln2': jnp.ones((HIDDEN,), jnp.float32),
            'wq': nrm(lk[0], (HIDDEN, HIDDEN)),
            'wk': nrm(lk[1], (HIDDEN, HIDDEN)),
            'wv': nrm(lk[2], (HIDDEN, HIDDEN)),
            'wo': nrm(lk[3], (HIDDEN, HIDDEN)),
            'wg': nrm(lk[4], (HIDDEN, INTERMEDIATE)),
            'wu': nrm(lk[5], (HIDDEN, INTERMEDIATE)),
            'wd': nrm(lk[6], (INTERMEDIATE, HIDDEN)),
        })
    return params


def transformers_model_forward(params, input_ids, positions):
    """Mirrors TransformersModel.forward: ids[None,...] -> model -> out[0,...].

    Embedding is an O(S*H) row gather here (replacing the one-hot matmul); the
    whole decoder stack (L layers + final norm) is ONE pallas_call.
    """
    s = input_ids.shape[0]
    layers = params['layers']

    # ---- embedding row gather (keeps the [V,H] table out of VMEM entirely) ----
    # TODO(synk): could also be done in-kernel with scalar-prefetched ids + DMA gather.
    x0 = jnp.take(params['embed'], input_ids, axis=0)                   # [S, H] f32

    # ---- hoisted constants (computed once, outside the kernel) ----
    cos, sin = rope_tables(positions, HEAD_DIM)                          # [S, D]
    cos_full = jnp.tile(cos, (1, NUM_HEADS))                             # [S, H]
    sin_full = jnp.tile(sin, (1, NUM_HEADS))                             # [S, H]

    # ---- per-layer weights stacked along a leading layer axis; matmul weights
    #      pre-cast to bf16 (MXU-native, half the DMA bytes / VMEM footprint) ----
    ln1 = jnp.stack([l['ln1'] for l in layers])[:, None, :]              # [L,1,H] f32
    ln2 = jnp.stack([l['ln2'] for l in layers])[:, None, :]              # [L,1,H] f32
    wqkv = jnp.stack([jnp.concatenate([l['wq'], l['wk'], l['wv']], axis=1)
                      for l in layers]).astype(jnp.bfloat16)             # [L,H,3H]
    wo = jnp.stack([l['wo'] for l in layers]).astype(jnp.bfloat16)       # [L,H,H]
    wgu = jnp.stack([jnp.concatenate([l['wg'], l['wu']], axis=1)
                     for l in layers]).astype(jnp.bfloat16)              # [L,H,2F]
    wd = jnp.stack([l['wd'] for l in layers]).astype(jnp.bfloat16)       # [L,F,H]
    fnorm = params['final_norm'].reshape(1, HIDDEN)                      # [1,H] f32

    c2 = lambda l: (0, 0)          # layer-invariant 2-D blocks
    w3 = lambda l: (l, 0, 0)       # per-layer stacked 3-D blocks

    return pl.pallas_call(
        _fused_decoder_kernel,
        out_shape=jax.ShapeDtypeStruct((s, HIDDEN), jnp.float32),
        grid_spec=pltpu.PrefetchScalarGridSpec(
            num_scalar_prefetch=0,
            grid=(NUM_LAYERS,),
            in_specs=[
                pl.BlockSpec((s, HIDDEN), c2),                    # x0 (embeddings)
                pl.BlockSpec((s, HIDDEN), c2),                    # cos (head-tiled)
                pl.BlockSpec((s, HIDDEN), c2),                    # sin (head-tiled)
                pl.BlockSpec((1, 1, HIDDEN), w3),                 # ln1[l]
                pl.BlockSpec((1, HIDDEN, 3 * HIDDEN), w3),        # wqkv[l] bf16
                pl.BlockSpec((1, HIDDEN, HIDDEN), w3),            # wo[l]   bf16
                pl.BlockSpec((1, 1, HIDDEN), w3),                 # ln2[l]
                pl.BlockSpec((1, HIDDEN, 2 * INTERMEDIATE), w3),  # wgu[l]  bf16
                pl.BlockSpec((1, INTERMEDIATE, HIDDEN), w3),      # wd[l]   bf16
                pl.BlockSpec((1, HIDDEN), c2),                    # final norm
            ],
            out_specs=pl.BlockSpec((s, HIDDEN), c2),
            scratch_shapes=[pltpu.VMEM((s, HIDDEN), jnp.float32)],  # residual stream
        ),
        compiler_params=pltpu.CompilerParams(
            dimension_semantics=("arbitrary",),         # layers are sequential
            vmem_limit_bytes=64 * 1024 * 1024,          # explicit (v7x: 64 MiB physical)
        ),
    )(x0, cos_full, sin_full, ln1, wqkv, wo, ln2, wgu, wd, fnorm)


def reference_forward(params, input_ids, positions):
    """Pure-JAX f32 reference for sanity checking."""
    def rmsnorm(x, w):
        return x * lax.rsqrt(jnp.mean(x * x, axis=-1, keepdims=True) + EPS) * w

    s = input_ids.shape[0]
    x = params['embed'][input_ids]
    cos, sin = rope_tables(positions, HEAD_DIM)

    def rope(t):  # [NH, S, D]
        t1, t2 = t[..., :HEAD_DIM // 2], t[..., HEAD_DIM // 2:]
        return t * cos[None] + jnp.concatenate([-t2, t1], axis=-1) * sin[None]

    mask = jnp.tril(jnp.ones((s, s), bool))
    for layer in params['layers']:
        h = rmsnorm(x, layer['ln1'])
        q = (h @ layer['wq']).reshape(s, NUM_HEADS, HEAD_DIM).transpose(1, 0, 2)
        k = (h @ layer['wk']).reshape(s, NUM_HEADS, HEAD_DIM).transpose(1, 0, 2)
        v = (h @ layer['wv']).reshape(s, NUM_HEADS, HEAD_DIM).transpose(1, 0, 2)
        q, k = rope(q), rope(k)
        sc = jnp.einsum('hqd,hkd->hqk', q, k) / (HEAD_DIM ** 0.5)
        sc = jnp.where(mask[None], sc, -1e30)
        p = jax.nn.softmax(sc, axis=-1)
        a = jnp.einsum('hqk,hkd->hqd', p, v).transpose(1, 0, 2).reshape(s, HIDDEN)
        x = x + a @ layer['wo']
        h = rmsnorm(x, layer['ln2'])
        x = x + (jax.nn.silu(h @ layer['wg']) * (h @ layer['wu'])) @ layer['wd']
    return rmsnorm(x, params['final_norm'])


if __name__ == "__main__":
    key = jax.random.PRNGKey(0)
    pkey, ikey = jax.random.split(key)
    params = init_params(pkey)

    input_ids = jax.random.randint(ikey, (SEQ,), 0, VOCAB, dtype=jnp.int32)
    positions = jnp.arange(SEQ, dtype=jnp.int32)

    hidden = jax.jit(transformers_model_forward)(params, input_ids, positions)
    hidden = jax.block_until_ready(hidden)

    ref = reference_forward(params, input_ids, positions)
    assert hidden.shape == (SEQ, HIDDEN)
    assert bool(jnp.all(jnp.isfinite(hidden)))
    # bf16 matmul operands + approx reciprocal vs. f32 reference: loose tolerance.
    assert bool(jnp.allclose(hidden, ref, atol=2e-2, rtol=2e-2))
    print("KERNEL_OK")
</pallas_src>

<mosaic_0001>
module attributes {stable_mosaic.version = 11 : i64} {
  func.func @_fused_decoder_kernel(%arg0: i32, %arg1: memref<8x32xf32, #tpu.memory_space<vmem>>, %arg2: memref<8x32xf32, #tpu.memory_space<vmem>>, %arg3: memref<8x32xf32, #tpu.memory_space<vmem>>, %arg4: memref<1x1x32xf32, #tpu.memory_space<vmem>>, %arg5: memref<1x32x96xbf16, #tpu.memory_space<vmem>>, %arg6: memref<1x32x32xbf16, #tpu.memory_space<vmem>>, %arg7: memref<1x1x32xf32, #tpu.memory_space<vmem>>, %arg8: memref<1x32x128xbf16, #tpu.memory_space<vmem>>, %arg9: memref<1x64x32xbf16, #tpu.memory_space<vmem>>, %arg10: memref<1x32xf32, #tpu.memory_space<vmem>>, %arg11: memref<8x32xf32, #tpu.memory_space<vmem>>, %arg12: memref<8x32xf32, #tpu.memory_space<vmem>>) attributes {dimension_semantics = [#tpu.dimension_semantics<arbitrary>], iteration_bounds = array<i64: 2>, scalar_prefetch = 0 : i64, scratch_operands = 1 : i64, tpu.core_type = #tpu.core_type<tc>, window_params = [{pipeline_mode = #tpu.pipeline_mode<synchronous>, transform_indices = @transform_0, window_bounds = array<i64: 8, 32>}, {pipeline_mode = #tpu.pipeline_mode<synchronous>, transform_indices = @transform_1, window_bounds = array<i64: 8, 32>}, {pipeline_mode = #tpu.pipeline_mode<synchronous>, transform_indices = @transform_2, window_bounds = array<i64: 8, 32>}, {transform_indices = @transform_3, window_bounds = array<i64: 1, 1, 32>}, {transform_indices = @transform_4, window_bounds = array<i64: 1, 32, 96>}, {transform_indices = @transform_5, window_bounds = array<i64: 1, 32, 32>}, {transform_indices = @transform_6, window_bounds = array<i64: 1, 1, 32>}, {transform_indices = @transform_7, window_bounds = array<i64: 1, 32, 128>}, {transform_indices = @transform_8, window_bounds = array<i64: 1, 64, 32>}, {pipeline_mode = #tpu.pipeline_mode<synchronous>, transform_indices = @transform_9, window_bounds = array<i64: 1, 32>}, {pipeline_mode = #tpu.pipeline_mode<synchronous>, transform_indices = @transform_10, window_bounds = array<i64: 8, 32>}]} {
    %c0_i32 = arith.constant 0 : i32
    %0 = arith.cmpi eq, %arg0, %c0_i32 : i32
    %1 = arith.extui %0 : i1 to i32
    %c0_i32_0 = arith.constant 0 : i32
    %2 = arith.cmpi ne, %1, %c0_i32_0 : i32
    scf.if %2 {
      %c0_67 = arith.constant 0 : index
      %c0_68 = arith.constant 0 : index
      %203 = vector.load %arg1[%c0_67, %c0_68] : memref<8x32xf32, #tpu.memory_space<vmem>>, vector<8x32xf32>
      %c0_69 = arith.constant 0 : index
      %c0_70 = arith.constant 0 : index
      %204 = vector.load %arg12[%c0_69, %c0_70] : memref<8x32xf32, #tpu.memory_space<vmem>>, vector<8x32xf32>
      tpu.vector_store %arg12[%c0_69, %c0_70], %203 {strides = array<i32>} : memref<8x32xf32, #tpu.memory_space<vmem>>, vector<8x32xf32>,
    } else {
    }
    %c0 = arith.constant 0 : index
    %c0_1 = arith.constant 0 : index
    %3 = vector.load %arg12[%c0, %c0_1] : memref<8x32xf32, #tpu.memory_space<vmem>>, vector<8x32xf32>
    %c0_2 = arith.constant 0 : index
    %c0_3 = arith.constant 0 : index
    %c0_4 = arith.constant 0 : index
    %4 = vector.load %arg4[%c0_2, %c0_3, %c0_4] : memref<1x1x32xf32, #tpu.memory_space<vmem>>, vector<1x1x32xf32>
    %5 = vector.shape_cast %4 : vector<1x1x32xf32> to vector<1x32xf32>
    %6 = arith.mulf %3, %3 : vector<8x32xf32>
    %cst = arith.constant dense<0.000000e+00> : vector<8xf32>
    %7 = vector.multi_reduction <add>, %6, %cst [1] : vector<8x32xf32> to vector<8xf32>
    %8 = vector.shape_cast %7 : vector<8xf32> to vector<8x1xf32>
    %cst_5 = arith.constant 3.200000e+01 : f32
    %9 = vector.broadcast %cst_5 : f32 to vector<8x1xf32>
    %10 = arith.divf %8, %9 : vector<8x1xf32>
    %cst_6 = arith.constant 9.99999997E-7 : f32
    %11 = vector.broadcast %cst_6 : f32 to vector<8x1xf32>
    %12 = arith.addf %10, %11 : vector<8x1xf32>
    %13 = math.rsqrt %12 : vector<8x1xf32>
    %14 = vector.broadcast %13 : vector<8x1xf32> to vector<8x32xf32>
    %15 = arith.mulf %3, %14 : vector<8x32xf32>
    %16 = vector.broadcast %5 : vector<1x32xf32> to vector<8x32xf32>
    %17 = arith.mulf %15, %16 : vector<8x32xf32>
    %18 = arith.truncf %17 : vector<8x32xf32> to vector<8x32xbf16>
    %c0_7 = arith.constant 0 : index
    %c0_8 = arith.constant 0 : index
    %c0_9 = arith.constant 0 : index
    %19 = vector.load %arg5[%c0_7, %c0_8, %c0_9] : memref<1x32x96xbf16, #tpu.memory_space<vmem>>, vector<1x32x96xbf16>
    %20 = vector.shape_cast %19 : vector<1x32x96xbf16> to vector<32x96xbf16>
    %cst_10 = arith.constant dense<0.000000e+00> : vector<8x96xf32>
    %21 = tpu.matmul %18, %20, %cst_10 {dimension_numbers = #tpu.dot_dimension_numbers<[1], [0], [0], [1], [0, 0, 1, 1], [], []>} : vector<8x32xbf16>, vector<32x96xbf16>, vector<8x96xf32> -> vector<8x96xf32>
    %22 = vector.extract_strided_slice %21 {offsets = [0, 0], sizes = [8, 32], strides = [1, 1]} : vector<8x96xf32> to vector<8x32xf32>
    %23 = vector.extract_strided_slice %21 {offsets = [0, 32], sizes = [8, 32], strides = [1, 1]} : vector<8x96xf32> to vector<8x32xf32>
    %24 = vector.extract_strided_slice %21 {offsets = [0, 64], sizes = [8, 32], strides = [1, 1]} : vector<8x96xf32> to vector<8x32xf32>
    %c0_11 = arith.constant 0 : index
    %c0_12 = arith.constant 0 : index
    %25 = vector.load %arg2[%c0_11, %c0_12] : memref<8x32xf32, #tpu.memory_space<vmem>>, vector<8x32xf32>
    %c0_13 = arith.constant 0 : index
    %c0_14 = arith.constant 0 : index
    %26 = vector.load %arg3[%c0_13, %c0_14] : memref<8x32xf32, #tpu.memory_space<vmem>>, vector<8x32xf32>
    %27 = vector.extract_strided_slice %22 {offsets = [0, 4], sizes = [8, 4], strides = [1, 1]} : vector<8x32xf32> to vector<8x4xf32>
    %cst_15 = arith.constant 0.000000e+00 : f32
    %28 = vector.broadcast %cst_15 : f32 to vector<8x4xf32>
    %29 = arith.subf %28, %27 : vector<8x4xf32>
    %30 = vector.extract_strided_slice %22 {offsets = [0, 0], sizes = [8, 4], strides = [1, 1]} : vector<8x32xf32> to vector<8x4xf32>
    %31 = vector.extract_strided_slice %22 {offsets = [0, 12], sizes = [8, 4], strides = [1, 1]} : vector<8x32xf32> to vector<8x4xf32>
    %cst_16 = arith.constant 0.000000e+00 : f32
    %32 = vector.broadcast %cst_16 : f32 to vector<8x4xf32>
    %33 = arith.subf %32, %31 : vector<8x4xf32>
    %34 = vector.extract_strided_slice %22 {offsets = [0, 8], sizes = [8, 4], strides = [1, 1]} : vector<8x32xf32> to vector<8x4xf32>
    %35 = vector.extract_strided_slice %22 {offsets = [0, 20], sizes = [8, 4], strides = [1, 1]} : vector<8x32xf32> to vector<8x4xf32>
    %cst_17 = arith.constant 0.000000e+00 : f32
    %36 = vector.broadcast %cst_17 : f32 to vector<8x4xf32>
    %37 = arith.subf %36, %35 : vector<8x4xf32>
    %38 = vector.extract_strided_slice %22 {offsets = [0, 16], sizes = [8, 4], strides = [1, 1]} : vector<8x32xf32> to vector<8x4xf32>
    %39 = vector.extract_strided_slice %22 {offsets = [0, 28], sizes = [8, 4], strides = [1, 1]} : vector<8x32xf32> to vector<8x4xf32>
    %cst_18 = arith.constant 0.000000e+00 : f32
    %40 = vector.broadcast %cst_18 : f32 to vector<8x4xf32>
    %41 = arith.subf %40, %39 : vector<8x4xf32>
    %42 = vector.extract_strided_slice %22 {offsets = [0, 24], sizes = [8, 4], strides = [1, 1]} : vector<8x32xf32> to vector<8x4xf32>
    %43 = arith.mulf %22, %25 : vector<8x32xf32>
    %44 = tpu.concatenate %29, %30, %33, %34, %37, %38, %41, %42 in 1 : vector<8x4xf32>, vector<8x4xf32>, vector<8x4xf32>, vector<8x4xf32>, vector<8x4xf32>, vector<8x4xf32>, vector<8x4xf32>, vector<8x4xf32> -> vector<8x32xf32>
    %45 = arith.mulf %44, %26 : vector<8x32xf32>
    %46 = arith.addf %43, %45 : vector<8x32xf32>
    %47 = vector.extract_strided_slice %23 {offsets = [0, 4], sizes = [8, 4], strides = [1, 1]} : vector<8x32xf32> to vector<8x4xf32>
    %cst_19 = arith.constant 0.000000e+00 : f32
    %48 = vector.broadcast %cst_19 : f32 to vector<8x4xf32>
    %49 = arith.subf %48, %47 : vector<8x4xf32>
    %50 = vector.extract_strided_slice %23 {offsets = [0, 0], sizes = [8, 4], strides = [1, 1]} : vector<8x32xf32> to vector<8x4xf32>
    %51 = vector.extract_strided_slice %23 {offsets = [0, 12], sizes = [8, 4], strides = [1, 1]} : vector<8x32xf32> to vector<8x4xf32>
    %cst_20 = arith.constant 0.000000e+00 : f32
    %52 = vector.broadcast %cst_20 : f32 to vector<8x4xf32>
    %53 = arith.subf %52, %51 : vector<8x4xf32>
    %54 = vector.extract_strided_slice %23 {offsets = [0, 8], sizes = [8, 4], strides = [1, 1]} : vector<8x32xf32> to vector<8x4xf32>
    %55 = vector.extract_strided_slice %23 {offsets = [0, 20], sizes = [8, 4], strides = [1, 1]} : vector<8x32xf32> to vector<8x4xf32>
    %cst_21 = arith.constant 0.000000e+00 : f32
    %56 = vector.broadcast %cst_21 : f32 to vector<8x4xf32>
    %57 = arith.subf %56, %55 : vector<8x4xf32>
    %58 = vector.extract_strided_slice %23 {offsets = [0, 16], sizes = [8, 4], strides = [1, 1]} : vector<8x32xf32> to vector<8x4xf32>
    %59 = vector.extract_strided_slice %23 {offsets = [0, 28], sizes = [8, 4], strides = [1, 1]} : vector<8x32xf32> to vector<8x4xf32>
    %cst_22 = arith.constant 0.000000e+00 : f32
    %60 = vector.broadcast %cst_22 : f32 to vector<8x4xf32>
    %61 = arith.subf %60, %59 : vector<8x4xf32>
    %62 = vector.extract_strided_slice %23 {offsets = [0, 24], sizes = [8, 4], strides = [1, 1]} : vector<8x32xf32> to vector<8x4xf32>
    %63 = arith.mulf %23, %25 : vector<8x32xf32>
    %64 = tpu.concatenate %49, %50, %53, %54, %57, %58, %61, %62 in 1 : vector<8x4xf32>, vector<8x4xf32>, vector<8x4xf32>, vector<8x4xf32>, vector<8x4xf32>, vector<8x4xf32>, vector<8x4xf32>, vector<8x4xf32> -> vector<8x32xf32>
    %65 = arith.mulf %64, %26 : vector<8x32xf32>
    %66 = arith.addf %63, %65 : vector<8x32xf32>
    %67 = tpu.iota {dimensions = array<i32: 0>} : vector<8x8xi32>
    %68 = tpu.iota {dimensions = array<i32: 1>} : vector<8x8xi32>
    %69 = arith.cmpi sle, %68, %67 : vector<8x8xi32>
    %cst_23 = arith.constant 0.000000e+00 : f32
    %cst_24 = arith.constant -1.000000e+30 : f32
    %70 = vector.broadcast %cst_23 : f32 to vector<8x8xf32>
    %71 = vector.broadcast %cst_24 : f32 to vector<8x8xf32>
    %72 = arith.select %69, %70, %71 : vector<8x8xi1>, vector<8x8xf32>
    %73 = vector.extract_strided_slice %46 {offsets = [0, 0], sizes = [8, 8], strides = [1, 1]} : vector<8x32xf32> to vector<8x8xf32>
    %74 = arith.truncf %73 : vector<8x8xf32> to vector<8x8xbf16>
    %75 = vector.extract_strided_slice %66 {offsets = [0, 0], sizes = [8, 8], strides = [1, 1]} : vector<8x32xf32> to vector<8x8xf32>
    %76 = arith.truncf %75 : vector<8x8xf32> to vector<8x8xbf16>
    %77 = vector.extract_strided_slice %24 {offsets = [0, 0], sizes = [8, 8], strides = [1, 1]} : vector<8x32xf32> to vector<8x8xf32>
    %78 = arith.truncf %77 : vector<8x8xf32> to vector<8x8xbf16>
    %cst_25 = arith.constant dense<0.000000e+00> : vector<8x8xf32>
    %79 = tpu.matmul %74, %76, %cst_25 {dimension_numbers = #tpu.dot_dimension_numbers<[1], [1], [0], [0], [0, 0, 1, 0], [], []>} : vector<8x8xbf16>, vector<8x8xbf16>, vector<8x8xf32> -> vector<8x8xf32>
    %cst_26 = arith.constant 0.353553385 : f32
    %80 = vector.broadcast %cst_26 : f32 to vector<8x8xf32>
    %81 = arith.mulf %79, %80 : vector<8x8xf32>
    %82 = arith.addf %81, %72 : vector<8x8xf32>
    %cst_27 = arith.constant dense<0xFF800000> : vector<8xf32>
    %83 = vector.multi_reduction <maximumf>, %82, %cst_27 [1] : vector<8x8xf32> to vector<8xf32>
    %84 = vector.shape_cast %83 : vector<8xf32> to vector<8x1xf32>
    %85 = vector.broadcast %84 : vector<8x1xf32> to vector<8x8xf32>
    %86 = arith.subf %82, %85 : vector<8x8xf32>
    %87 = math.exp %86 : vector<8x8xf32>
    %cst_28 = arith.constant dense<0.000000e+00> : vector<8xf32>
    %88 = vector.multi_reduction <add>, %87, %cst_28 [1] : vector<8x8xf32> to vector<8xf32>
    %89 = vector.shape_cast %88 : vector<8xf32> to vector<8x1xf32>
    %90 = tpu.reciprocal %89 {approx = true} : vector<8x1xf32> -> vector<8x1xf32>
    %91 = vector.broadcast %90 : vector<8x1xf32> to vector<8x8xf32>
    %92 = arith.mulf %87, %91 : vector<8x8xf32>
    %93 = arith.truncf %92 : vector<8x8xf32> to vector<8x8xbf16>
    %cst_29 = arith.constant dense<0.000000e+00> : vector<8x8xf32>
    %94 = tpu.matmul %93, %78, %cst_29 {dimension_numbers = #tpu.dot_dimension_numbers<[1], [0], [0], [1], [0, 0, 1, 1], [], []>} : vector<8x8xbf16>, vector<8x8xbf16>, vector<8x8xf32> -> vector<8x8xf32>
    %95 = vector.extract_strided_slice %46 {offsets = [0, 8], sizes = [8, 8], strides = [1, 1]} : vector<8x32xf32> to vector<8x8xf32>
    %96 = arith.truncf %95 : vector<8x8xf32> to vector<8x8xbf16>
    %97 = vector.extract_strided_slice %66 {offsets = [0, 8], sizes = [8, 8], strides = [1, 1]} : vector<8x32xf32> to vector<8x8xf32>
    %98 = arith.truncf %97 : vector<8x8xf32> to vector<8x8xbf16>
    %99 = vector.extract_strided_slice %24 {offsets = [0, 8], sizes = [8, 8], strides = [1, 1]} : vector<8x32xf32> to vector<8x8xf32>
    %100 = arith.truncf %99 : vector<8x8xf32> to vector<8x8xbf16>
    %cst_30 = arith.constant dense<0.000000e+00> : vector<8x8xf32>
    %101 = tpu.matmul %96, %98, %cst_30 {dimension_numbers = #tpu.dot_dimension_numbers<[1], [1], [0], [0], [0, 0, 1, 0], [], []>} : vector<8x8xbf16>, vector<8x8xbf16>, vector<8x8xf32> -> vector<8x8xf32>
    %cst_31 = arith.constant 0.353553385 : f32
    %102 = vector.broadcast %cst_31 : f32 to vector<8x8xf32>
    %103 = arith.mulf %101, %102 : vector<8x8xf32>
    %104 = arith.addf %103, %72 : vector<8x8xf32>
    %cst_32 = arith.constant dense<0xFF800000> : vector<8xf32>
    %105 = vector.multi_reduction <maximumf>, %104, %cst_32 [1] : vector<8x8xf32> to vector<8xf32>
    %106 = vector.shape_cast %105 : vector<8xf32> to vector<8x1xf32>
    %107 = vector.broadcast %106 : vector<8x1xf32> to vector<8x8xf32>
    %108 = arith.subf %104, %107 : vector<8x8xf32>
    %109 = math.exp %108 : vector<8x8xf32>
    %cst_33 = arith.constant dense<0.000000e+00> : vector<8xf32>
    %110 = vector.multi_reduction <add>, %109, %cst_33 [1] : vector<8x8xf32> to vector<8xf32>
    %111 = vector.shape_cast %110 : vector<8xf32> to vector<8x1xf32>
    %112 = tpu.reciprocal %111 {approx = true} : vector<8x1xf32> -> vector<8x1xf32>
    %113 = vector.broadcast %112 : vector<8x1xf32> to vector<8x8xf32>
    %114 = arith.mulf %109, %113 : vector<8x8xf32>
    %115 = arith.truncf %114 : vector<8x8xf32> to vector<8x8xbf16>
    %cst_34 = arith.constant dense<0.000000e+00> : vector<8x8xf32>
    %116 = tpu.matmul %115, %100, %cst_34 {dimension_numbers = #tpu.dot_dimension_numbers<[1], [0], [0], [1], [0, 0, 1, 1], [], []>} : vector<8x8xbf16>, vector<8x8xbf16>, vector<8x8xf32> -> vector<8x8xf32>
    %117 = vector.extract_strided_slice %46 {offsets = [0, 16], sizes = [8, 8], strides = [1, 1]} : vector<8x32xf32> to vector<8x8xf32>
    %118 = arith.truncf %117 : vector<8x8xf32> to vector<8x8xbf16>
    %119 = vector.extract_strided_slice %66 {offsets = [0, 16], sizes = [8, 8], strides = [1, 1]} : vector<8x32xf32> to vector<8x8xf32>
    %120 = arith.truncf %119 : vector<8x8xf32> to vector<8x8xbf16>
    %121 = vector.extract_strided_slice %24 {offsets = [0, 16], sizes = [8, 8], strides = [1, 1]} : vector<8x32xf32> to vector<8x8xf32>
    %122 = arith.truncf %121 : vector<8x8xf32> to vector<8x8xbf16>
    %cst_35 = arith.constant dense<0.000000e+00> : vector<8x8xf32>
    %123 = tpu.matmul %118, %120, %cst_35 {dimension_numbers = #tpu.dot_dimension_numbers<[1], [1], [0], [0], [0, 0, 1, 0], [], []>} : vector<8x8xbf16>, vector<8x8xbf16>, vector<8x8xf32> -> vector<8x8xf32>
    %cst_36 = arith.constant 0.353553385 : f32
    %124 = vector.broadcast %cst_36 : f32 to vector<8x8xf32>
    %125 = arith.mulf %123, %124 : vector<8x8xf32>
    %126 = arith.addf %125, %72 : vector<8x8xf32>
    %cst_37 = arith.constant dense<0xFF800000> : vector<8xf32>
    %127 = vector.multi_reduction <maximumf>, %126, %cst_37 [1] : vector<8x8xf32> to vector<8xf32>
    %128 = vector.shape_cast %127 : vector<8xf32> to vector<8x1xf32>
    %129 = vector.broadcast %128 : vector<8x1xf32> to vector<8x8xf32>
    %130 = arith.subf %126, %129 : vector<8x8xf32>
    %131 = math.exp %130 : vector<8x8xf32>
    %cst_38 = arith.constant dense<0.000000e+00> : vector<8xf32>
    %132 = vector.multi_reduction <add>, %131, %cst_38 [1] : vector<8x8xf32> to vector<8xf32>
    %133 = vector.shape_cast %132 : vector<8xf32> to vector<8x1xf32>
    %134 = tpu.reciprocal %133 {approx = true} : vector<8x1xf32> -> vector<8x1xf32>
    %135 = vector.broadcast %134 : vector<8x1xf32> to vector<8x8xf32>
    %136 = arith.mulf %131, %135 : vector<8x8xf32>
    %137 = arith.truncf %136 : vector<8x8xf32> to vector<8x8xbf16>
    %cst_39 = arith.constant dense<0.000000e+00> : vector<8x8xf32>
    %138 = tpu.matmul %137, %122, %cst_39 {dimension_numbers = #tpu.dot_dimension_numbers<[1], [0], [0], [1], [0, 0, 1, 1], [], []>} : vector<8x8xbf16>, vector<8x8xbf16>, vector<8x8xf32> -> vector<8x8xf32>
    %139 = vector.extract_strided_slice %46 {offsets = [0, 24], sizes = [8, 8], strides = [1, 1]} : vector<8x32xf32> to vector<8x8xf32>
    %140 = arith.truncf %139 : vector<8x8xf32> to vector<8x8xbf16>
    %141 = vector.extract_strided_slice %66 {offsets = [0, 24], sizes = [8, 8], strides = [1, 1]} : vector<8x32xf32> to vector<8x8xf32>
    %142 = arith.truncf %141 : vector<8x8xf32> to vector<8x8xbf16>
    %143 = vector.extract_strided_slice %24 {offsets = [0, 24], sizes = [8, 8], strides = [1, 1]} : vector<8x32xf32> to vector<8x8xf32>
    %144 = arith.truncf %143 : vector<8x8xf32> to vector<8x8xbf16>
    %cst_40 = arith.constant dense<0.000000e+00> : vector<8x8xf32>
    %145 = tpu.matmul %140, %142, %cst_40 {dimension_numbers = #tpu.dot_dimension_numbers<[1], [1], [0], [0], [0, 0, 1, 0], [], []>} : vector<8x8xbf16>, vector<8x8xbf16>, vector<8x8xf32> -> vector<8x8xf32>
    %cst_41 = arith.constant 0.353553385 : f32
    %146 = vector.broadcast %cst_41 : f32 to vector<8x8xf32>
    %147 = arith.mulf %145, %146 : vector<8x8xf32>
    %148 = arith.addf %147, %72 : vector<8x8xf32>
    %cst_42 = arith.constant dense<0xFF800000> : vector<8xf32>
    %149 = vector.multi_reduction <maximumf>, %148, %cst_42 [1] : vector<8x8xf32> to vector<8xf32>
    %150 = vector.shape_cast %149 : vector<8xf32> to vector<8x1xf32>
    %151 = vector.broadcast %150 : vector<8x1xf32> to vector<8x8xf32>
    %152 = arith.subf %148, %151 : vector<8x8xf32>
    %153 = math.exp %152 : vector<8x8xf32>
    %cst_43 = arith.constant dense<0.000000e+00> : vector<8xf32>
    %154 = vector.multi_reduction <add>, %153, %cst_43 [1] : vector<8x8xf32> to vector<8xf32>
    %155 = vector.shape_cast %154 : vector<8xf32> to vector<8x1xf32>
    %156 = tpu.reciprocal %155 {approx = true} : vector<8x1xf32> -> vector<8x1xf32>
    %157 = vector.broadcast %156 : vector<8x1xf32> to vector<8x8xf32>
    %158 = arith.mulf %153, %157 : vector<8x8xf32>
    %159 = arith.truncf %158 : vector<8x8xf32> to vector<8x8xbf16>
    %cst_44 = arith.constant dense<0.000000e+00> : vector<8x8xf32>
    %160 = tpu.matmul %159, %144, %cst_44 {dimension_numbers = #tpu.dot_dimension_numbers<[1], [0], [0], [1], [0, 0, 1, 1], [], []>} : vector<8x8xbf16>, vector<8x8xbf16>, vector<8x8xf32> -> vector<8x8xf32>
    %161 = tpu.concatenate %94, %116, %138, %160 in 1 : vector<8x8xf32>, vector<8x8xf32>, vector<8x8xf32>, vector<8x8xf32> -> vector<8x32xf32>
    %162 = arith.truncf %161 : vector<8x32xf32> to vector<8x32xbf16>
    %c0_45 = arith.constant 0 : index
    %c0_46 = arith.constant 0 : index
    %c0_47 = arith.constant 0 : index
    %163 = vector.load %arg6[%c0_45, %c0_46, %c0_47] : memref<1x32x32xbf16, #tpu.memory_space<vmem>>, vector<1x32x32xbf16>
    %164 = vector.shape_cast %163 : vector<1x32x32xbf16> to vector<32x32xbf16>
    %cst_48 = arith.constant dense<0.000000e+00> : vector<8x32xf32>
    %165 = tpu.matmul %162, %164, %cst_48 {dimension_numbers = #tpu.dot_dimension_numbers<[1], [0], [0], [1], [0, 0, 1, 1], [], []>} : vector<8x32xbf16>, vector<32x32xbf16>, vector<8x32xf32> -> vector<8x32xf32>
    %166 = arith.addf %3, %165 : vector<8x32xf32>
    %c0_49 = arith.constant 0 : index
    %c0_50 = arith.constant 0 : index
    %c0_51 = arith.constant 0 : index
    %167 = vector.load %arg7[%c0_49, %c0_50, %c0_51] : memref<1x1x32xf32, #tpu.memory_space<vmem>>, vector<1x1x32xf32>
    %168 = vector.shape_cast %167 : vector<1x1x32xf32> to vector<1x32xf32>
    %169 = arith.mulf %166, %166 : vector<8x32xf32>
    %cst_52 = arith.constant dense<0.000000e+00> : vector<8xf32>
    %170 = vector.multi_reduction <add>, %169, %cst_52 [1] : vector<8x32xf32> to vector<8xf32>
    %171 = vector.shape_cast %170 : vector<8xf32> to vector<8x1xf32>
    %cst_53 = arith.constant 3.200000e+01 : f32
    %172 = vector.broadcast %cst_53 : f32 to vector<8x1xf32>
    %173 = arith.divf %171, %172 : vector<8x1xf32>
    %cst_54 = arith.constant 9.99999997E-7 : f32
    %174 = vector.broadcast %cst_54 : f32 to vector<8x1xf32>
    %175 = arith.addf %173, %174 : vector<8x1xf32>
    %176 = math.rsqrt %175 : vector<8x1xf32>
    %177 = vector.broadcast %176 : vector<8x1xf32> to vector<8x32xf32>
    %178 = arith.mulf %166, %177 : vector<8x32xf32>
    %179 = vector.broadcast %168 : vector<1x32xf32> to vector<8x32xf32>
    %180 = arith.mulf %178, %179 : vector<8x32xf32>
    %181 = arith.truncf %180 : vector<8x32xf32> to vector<8x32xbf16>
    %c0_55 = arith.constant 0 : index
    %c0_56 = arith.constant 0 : index
    %c0_57 = arith.constant 0 : index
    %182 = vector.load %arg8[%c0_55, %c0_56, %c0_57] : memref<1x32x128xbf16, #tpu.memory_space<vmem>>, vector<1x32x128xbf16>
    %183 = vector.shape_cast %182 : vector<1x32x128xbf16> to vector<32x128xbf16>
    %cst_58 = arith.constant dense<0.000000e+00> : vector<8x128xf32>
    %184 = tpu.matmul %181, %183, %cst_58 {dimension_numbers = #tpu.dot_dimension_numbers<[1], [0], [0], [1], [0, 0, 1, 1], [], []>} : vector<8x32xbf16>, vector<32x128xbf16>, vector<8x128xf32> -> vector<8x128xf32>
    %185 = vector.extract_strided_slice %184 {offsets = [0, 0], sizes = [8, 64], strides = [1, 1]} : vector<8x128xf32> to vector<8x64xf32>
    %186 = vector.extract_strided_slice %184 {offsets = [0, 64], sizes = [8, 64], strides = [1, 1]} : vector<8x128xf32> to vector<8x64xf32>
    %187 = arith.negf %185 : vector<8x64xf32>
    %188 = math.exp %187 : vector<8x64xf32>
    %cst_59 = arith.constant 1.000000e+00 : f32
    %189 = vector.broadcast %cst_59 : f32 to vector<8x64xf32>
    %190 = arith.addf %189, %188 : vector<8x64xf32>
    %191 = arith.divf %189, %190 : vector<8x64xf32>
    %192 = arith.mulf %185, %191 : vector<8x64xf32>
    %193 = arith.mulf %192, %186 : vector<8x64xf32>
    %194 = arith.truncf %193 : vector<8x64xf32> to vector<8x64xbf16>
    %c0_60 = arith.constant 0 : index
    %c0_61 = arith.constant 0 : index
    %c0_62 = arith.constant 0 : index
    %195 = vector.load %arg9[%c0_60, %c0_61, %c0_62] : memref<1x64x32xbf16, #tpu.memory_space<vmem>>, vector<1x64x32xbf16>
    %196 = vector.shape_cast %195 : vector<1x64x32xbf16> to vector<64x32xbf16>
    %cst_63 = arith.constant dense<0.000000e+00> : vector<8x32xf32>
    %197 = tpu.matmul %194, %196, %cst_63 {dimension_numbers = #tpu.dot_dimension_numbers<[1], [0], [0], [1], [0, 0, 1, 1], [], []>} : vector<8x64xbf16>, vector<64x32xbf16>, vector<8x32xf32> -> vector<8x32xf32>
    %198 = arith.addf %166, %197 : vector<8x32xf32>
    %c0_64 = arith.constant 0 : index
    %c0_65 = arith.constant 0 : index
    %199 = vector.load %arg12[%c0_64, %c0_65] : memref<8x32xf32, #tpu.memory_space<vmem>>, vector<8x32xf32>
    tpu.vector_store %arg12[%c0_64, %c0_65], %198 {strides = array<i32>} : memref<8x32xf32, #tpu.memory_space<vmem>>, vector<8x32xf32>,
    %c1_i32 = arith.constant 1 : i32
    %200 = arith.cmpi eq, %arg0, %c1_i32 : i32
    %201 = arith.extui %200 : i1 to i32
    %c0_i32_66 = arith.constant 0 : i32
    %202 = arith.cmpi ne, %201, %c0_i32_66 : i32
    scf.if %202 {
      %c0_67 = arith.constant 0 : index
      %c0_68 = arith.constant 0 : index
      %203 = vector.load %arg10[%c0_67, %c0_68] : memref<1x32xf32, #tpu.memory_space<vmem>>, vector<1x32xf32>
      %204 = arith.mulf %198, %198 : vector<8x32xf32>
      %cst_69 = arith.constant dense<0.000000e+00> : vector<8xf32>
      %205 = vector.multi_reduction <add>, %204, %cst_69 [1] : vector<8x32xf32> to vector<8xf32>
      %206 = vector.shape_cast %205 : vector<8xf32> to vector<8x1xf32>
      %cst_70 = arith.constant 3.200000e+01 : f32
      %207 = vector.broadcast %cst_70 : f32 to vector<8x1xf32>
      %208 = arith.divf %206, %207 : vector<8x1xf32>
      %cst_71 = arith.constant 9.99999997E-7 : f32
      %209 = vector.broadcast %cst_71 : f32 to vector<8x1xf32>
      %210 = arith.addf %208, %209 : vector<8x1xf32>
      %211 = math.rsqrt %210 : vector<8x1xf32>
      %212 = vector.broadcast %211 : vector<8x1xf32> to vector<8x32xf32>
      %213 = arith.mulf %198, %212 : vector<8x32xf32>
      %214 = vector.broadcast %203 : vector<1x32xf32> to vector<8x32xf32>
      %215 = arith.mulf %213, %214 : vector<8x32xf32>
      %c0_72 = arith.constant 0 : index
      %c0_73 = arith.constant 0 : index
      %216 = vector.load %arg11[%c0_72, %c0_73] : memref<8x32xf32, #tpu.memory_space<vmem>>, vector<8x32xf32>
      tpu.vector_store %arg11[%c0_72, %c0_73], %215 {strides = array<i32>} : memref<8x32xf32, #tpu.memory_space<vmem>>, vector<8x32xf32>,
    } else {
    }
    return
  }
  func.func @transform_0(%arg0: i32) -> (i32, i32) {
    %c0_i32 = arith.constant 0 : i32
    %c0_i32_0 = arith.constant 0 : i32
    %c0_i32_1 = arith.constant 0 : i32
    return %c0_i32, %c0_i32_0 : i32, i32
  }
  func.func @transform_1(%arg0: i32) -> (i32, i32) {
    %c0_i32 = arith.constant 0 : i32
    %c0_i32_0 = arith.constant 0 : i32
    %c0_i32_1 = arith.constant 0 : i32
    return %c0_i32, %c0_i32_0 : i32, i32
  }
  func.func @transform_2(%arg0: i32) -> (i32, i32) {
    %c0_i32 = arith.constant 0 : i32
    %c0_i32_0 = arith.constant 0 : i32
    %c0_i32_1 = arith.constant 0 : i32
    return %c0_i32, %c0_i32_0 : i32, i32
  }
  func.func @transform_3(%arg0: i32) -> (i32, i32, i32) {
    %c0_i32 = arith.constant 0 : i32
    %c0_i32_0 = arith.constant 0 : i32
    %c0_i32_1 = arith.constant 0 : i32
    return %arg0, %c0_i32, %c0_i32_0 : i32, i32, i32
  }
  func.func @transform_4(%arg0: i32) -> (i32, i32, i32) {
    %c0_i32 = arith.constant 0 : i32
    %c0_i32_0 = arith.constant 0 : i32
    %c0_i32_1 = arith.constant 0 : i32
    return %arg0, %c0_i32, %c0_i32_0 : i32, i32, i32
  }
  func.func @transform_5(%arg0: i32) -> (i32, i32, i32) {
    %c0_i32 = arith.constant 0 : i32
    %c0_i32_0 = arith.constant 0 : i32
    %c0_i32_1 = arith.constant 0 : i32
    return %arg0, %c0_i32, %c0_i32_0 : i32, i32, i32
  }
  func.func @transform_6(%arg0: i32) -> (i32, i32, i32) {
    %c0_i32 = arith.constant 0 : i32
    %c0_i32_0 = arith.constant 0 : i32
    %c0_i32_1 = arith.constant 0 : i32
    return %arg0, %c0_i32, %c0_i32_0 : i32, i32, i32
  }
  func.func @transform_7(%arg0: i32) -> (i32, i32, i32) {
    %c0_i32 = arith.constant 0 : i32
    %c0_i32_0 = arith.constant 0 : i32
    %c0_i32_1 = arith.constant 0 : i32
    return %arg0, %c0_i32, %c0_i32_0 : i32, i32, i32
  }
  func.func @transform_8(%arg0: i32) -> (i32, i32, i32) {
    %c0_i32 = arith.constant 0 : i32
    %c0_i32_0 = arith.constant 0 : i32
    %c0_i32_1 = arith.constant 0 : i32
    return %arg0, %c0_i32, %c0_i32_0 : i32, i32, i32
  }
  func.func @transform_9(%arg0: i32) -> (i32, i32) {
    %c0_i32 = arith.constant 0 : i32
    %c0_i32_0 = arith.constant 0 : i32
    %c0_i32_1 = arith.constant 0 : i32
    return %c0_i32, %c0_i32_0 : i32, i32
  }
  func.func @transform_10(%arg0: i32) -> (i32, i32) {
    %c0_i32 = arith.constant 0 : i32
    %c0_i32_0 = arith.constant 0 : i32
    %c0_i32_1 = arith.constant 0 : i32
    return %c0_i32, %c0_i32_0 : i32, i32
  }
}

</mosaic_0001>

<bundles_post_ra>
// kernel: tile.14
= control target key start
LH: loop header
LB: loop body
LE: loop exit
PB: predicated region body
PF: predicated region fallthrough
CT: control target
= control target key end

     0   :  { %s183_s0 = inlined_call_operand.vmem [shape: f32[8,4,8], index: 0, kind: input, shape index: {}]   ;;  %s184_s1 = inlined_call_operand.hbm [shape: f32[8,32], index: 1, kind: output, shape index: {}]  }
   0x1   :  { %v93_v0 = vld [vmem:[%s183_s0 + $0x1c] sm:$0xf]  ;;  %v94_v1 = vld [vmem:[%s183_s0 + $0x18] sm:$0xf]  ;;  %v95_v2 = vld [vmem:[%s183_s0 + $0x14] sm:$0xf] }
   0x2   :  { %9 = vst [vmem:[#allocation2 + $0x38] sm:$0xf] %v93_v0  ;;  %14 = vst [vmem:[#allocation2 + $0x30] sm:$0xf] %v94_v1  ;;  %v96_v3 = vld [vmem:[%s183_s0 + $0x10] sm:$0xf] }
   0x3   :  { %19 = vst [vmem:[#allocation2 + $0x28] sm:$0xf] %v95_v2  ;;  %v97_v4 = vld [vmem:[%s183_s0 + $0xc] sm:$0xf]  ;;  %v98_v5 = vld [vmem:[%s183_s0 + $0x8] sm:$0xf] }
   0x4   :  { %24 = vst [vmem:[#allocation2 + $0x20] sm:$0xf] %v96_v3  ;;  %29 = vst [vmem:[#allocation2 + $0x18] sm:$0xf] %v97_v4  ;;  %v99_v6 = vld [vmem:[%s183_s0 + $0x4] sm:$0xf] }
   0x5   :  { %34 = vst [vmem:[#allocation2 + $0x10] sm:$0xf] %v98_v5  ;;  %v39_v7 = vld [vmem:[%s183_s0] sm:$0xf]  ;;  %38 = vst [vmem:[#allocation2 + $0x8] sm:$0xf] %v99_v6 }
   0x6   :  { %40 = vst [vmem:[#allocation2] sm:$0xf] %v39_v7 }
   0x7   :  { %2 = vsyncpa [#allocation1], 0  ;;  %vm43_vm0 = vcmask 1047556   ;;  %vm45_vm1 = vcmask 64512   ;;  %s128_s0 = smov 24   ;;  %s129_s22 = smov 8  }
   0x8   :  { %s130_s23 = smov 16   ;;  %vm55_vm2 = vcmask 261312   ;;  %s131_s24 = smov [#allocation0]   ;;  %vm65_vm3 = vcmask 195712   ;;  %vm75_vm4 = vcmask 130112  }
   0x9   :  { %s81_s25 = sshll.u32 %s131_s24, 4  ;;  %s82_s25 = int_to_ptr.vmem [resolvable:$true] %s81_s25 }
   0xa   :  { %s104_s26 = scalar_lea.vmem %s82_s25, 128  ;;  %p109_p1 = scmp.lt.s32.totalorder %s82_s25, %s82_s25 }
   0xb   :  { %v50_v8 = vld [vmem:[#allocation2 + $0x3] ss:$8 sm:$0xf0]   ;;  %v60_v9 = vld [vmem:[#allocation2 + $0x2] ss:$8 sm:$0xf0]   ;;  %p105_p0 = scmp.ne.s32.totalorder %s82_s25, %s104_s26  ;;  %p110_p2 = scmp.lt.s32.totalorder %s104_s26, %s104_s26 }
   0xc   :  { %v70_v14 = vld [vmem:[#allocation2 + $0x1] ss:$8 sm:$0xf0]   ;;  %v42_v17 = vld [vmem:[#allocation2] ss:$8 sm:$0xf0]  }
   0xd   :  { %v48_v10 = vld [vmem:[#allocation2 + $0x3] ss:$8 sm:$0xf]   ;;  %v58_v11 = vld [vmem:[#allocation2 + $0x2] ss:$8 sm:$0xf]   ;;  %p111_p3 = por %p110_p2, %p109_p1 }
   0xe   :  { %v52_v12 = vsel %vm43_vm0, %v50_v8, %v48_v10  ;;  %v68_v13 = vld [vmem:[#allocation2 + $0x1] ss:$8 sm:$0xf]   ;;  %v41_v16 = vld [vmem:[#allocation2] ss:$8 sm:$0xf]   ;;  %v62_v18 = vsel %vm43_vm0, %v60_v9, %v58_v11 }
   0xf   :  { %53 = vrot.lane.b32.xlu0 %v52_v12, %s128_s0  ;;  %v72_v15 = vsel %vm43_vm0, %v70_v14, %v68_v13  ;;  %v44_v19 = vsel %vm43_vm0, %v42_v17, %v41_v16  ;;  %p112_p4 = pnand %p111_p3, %p105_p0 }
  0x10   :  { %73 = vrot.lane.b32.xlu1 %v72_v15, %s129_s22  ;;  %46 = vst.msk [vmem:[#allocation0] sm:$0xff] %vm45_vm1, %v44_v19  }
  0x13   :  { %63 = vrot.lane.b32.xlu0 %v62_v18, %s130_s23 }
  0x81   :  { %v54_v20 = vpop.permute.xlu0 %53  }
  0x82   :  { %56 = vst.msk [vmem:[#allocation0] sm:$0xff] %vm55_vm2, %v54_v20   ;;  %v74_v21 = vpop.permute.xlu1 %73  }
  0x85   :  { %v64_v22 = vpop.permute.xlu0 %63  }
  0x86   :  { %66 = vst.msk [vmem:[#allocation0] sm:$0xff] %vm65_vm3, %v64_v22  }
  0x87   :  { %76 = vst.msk [vmem:[#allocation0] sm:$0xff] %vm75_vm4, %v74_v21  }
  0x88   :  { %115 = shalt.err (!%p112_p4)
}
  0x89   :  { %s116_s29 = scalar_lea.hbm %s184_s1, 128 }
  0x8a   :  { %p117_p5 = scmp.ne.s32.totalorder %s184_s1, %s116_s29  ;;  %p120_p6 = scmp.lt.u32.totalorder %s116_s29, %s184_s1 }
  0x8c   :  { %p122_p7 = pnand %p120_p6, %p117_p5 }
  0x8e   :  { %125 = shalt.err (!%p122_p7)
}
  0x8f   :  { %84 = dma.vmem_to_hbm [thread:$0]  %s82_s25, 128, %s184_s1, [#allocation1]  }
  0x90   :  { %126 = dma.done.wait [#allocation1], 128  }
  0x91   :  { %127 = vsyncadd [#allocation1], 4294967168 }
  0x92   :  { %86 = vsyncpa [#allocation1], 1 }

// kernel: transformers_model_forward.1
= control target key start
LH: loop header
LB: loop body
LE: loop exit
PB: predicated region body
PF: predicated region fallthrough
CT: control target
= control target key end

     0   :  { %s3051_s0 = inlined_call_operand.hbm [shape: f32[8,32], index: 0, kind: input, shape index: {}]   ;;  %s3052_s1 = inlined_call_operand.hbm [shape: f32[8,32], index: 1, kind: input, shape index: {}]   ;;  %s3053_s2 = inlined_call_operand.hbm [shape: f32[8,32], index: 2, kind: input, shape index: {}]   ;;  %s3054_s3 = inlined_call_operand.hbm [shape: f32[2,1,32], index: 3, kind: input, shape index: {}]   ;;  %s3055_s4 = inlined_call_operand.hbm [shape: bf16[2,32,96], index: 4, kind: input, shape index: {}]   ;;  %s3056_s5 = inlined_call_operand.hbm [shape: bf16[2,32,32], index: 5, kind: input, shape index: {}]   ;;  %s3057_s6 = inlined_call_operand.hbm [shape: f32[2,1,32], index: 6, kind: input, shape index: {}]   ;;  %s3058_s7 = inlined_call_operand.hbm [shape: bf16[2,32,128], index: 7, kind: input, shape index: {}]   ;;  %s3059_s8 = inlined_call_operand.hbm [shape: bf16[2,64,32], index: 8, kind: input, shape index: {}]   ;;  %s3060_s9 = inlined_call_operand.hbm [shape: f32[1,32], index: 9, kind: input, shape index: {}]   ;;  %s3061_s10 = inlined_call_operand.hbm [shape: f32[8,32], index: 10, kind: output, shape index: {}]  }
   0x1   :  { %3087 = sst [smem:[#allocation35_spill]] %s3052_s1 }
   0x2   :  { %3088 = sst [smem:[#allocation36_spill]] %s3054_s3 }
   0x3   :  { %3089 = sst [smem:[#allocation37_spill]] %s3056_s5 }
   0x4   :  { %3090 = sst [smem:[#allocation38_spill]] %s3058_s7 }
   0x5   :  { %3091 = sst [smem:[#allocation39_spill]] %s3059_s8 }
   0x6   :  { %3092 = sst [smem:[#allocation40_spill]] %s3061_s10 }
   0x7   :  { %15 = vsyncpa [#allocation4], 0 }
   0x8   :  { %16 = vsyncpa [#allocation7], 0 }
   0x9   :  { %17 = vsyncpa [#allocation10], 0 }
   0xa   :  { %19 = vsyncpa [#allocation10 + $0x1], 0 }
   0xb   :  { %20 = vsyncpa [#allocation13], 0 }
   0xc   :  { %22 = vsyncpa [#allocation13 + $0x1], 0 }
   0xd   :  { %23 = vsyncpa [#allocation16], 0 }
   0xe   :  { %25 = vsyncpa [#allocation16 + $0x1], 0 }
   0xf   :  { %26 = vsyncpa [#allocation19], 0 }
  0x10   :  { %27 = vsyncpa [#allocation5], 0  ;;  %s2476_s13 = smov 0   ;;  %s2478_s14 = smov 0  }
  0x11   :  { %s2480_s15 = smov 0   ;;  %s2482_s16 = smov 0  }
  0x12 LB: > { %3093 = sst [smem:[#allocation28_spill]] %s2376_s14  ;;  %s2495_s17 = sadd.s32 4294967295, %s2384_s16   ;;  %s2384_s16 = sphi %s2482_s16, %s3138_s16   ;;  %s2380_s15 = sphi %s2480_s15, %s3141_s15   ;;  %s2376_s14 = sphi %s2478_s14, %s3140_s14   ;;  %s2372_s13 = sphi %s2476_s13, %s3139_s13  }
  0x13   : > { %3094 = sst [smem:[#allocation29_spill]] %s2380_s15  ;;  %p116_p0 = scmp.ne.s32.totalorder %s2376_s14, %s2372_s13 }
  0x14   : > { %3095 = sst [smem:[#allocation30_spill]] %s2495_s17  ;;  %p3062_p1 = scmp.eq.s32.totalorder %s2495_s17, 0 }
  0x15   : > { %p1657_p2 = scmp.ge.s32.totalorder %s2384_s16, 1  ;;  %p299_p3 = scmp.lt.s32.totalorder %s2384_s16, 3 }
  0x16   : > { %p2504_p5 = por %p3062_p1, %p116_p0  ;;  %s2386_s20 = smov [#allocation6]  }
  0x17   : > { %p2508_p6 = pnand %p1657_p2, %p299_p3  ;;  %s323_s21 = sshll.u32 %s2386_s20, 4  ;;  %s324_s21 = int_to_ptr.vmem [resolvable:$true] %s323_s21 }
  0x18   : > { %s3096_s18 = scalar_select %p2504_p5, 1, 0 }
  0x19   : > { %s3098_s19 = scalar_select %p2508_p6, 1, 0 }
  0x1a   : > { %3097 = sst [smem:[#allocation31_spill]] %s3096_s18  ;;  %p1868_p7 = pneg %p2508_p6 }
  0x1b   : > { %3099 = sst [smem:[#allocation32_spill]] %s3098_s19  ;;  %s2515_s22 = sadd.s32 1, %s2384_s16  }
  0x1c   : > { %3100 = sst [smem:[#allocation33_spill]] %s2515_s22  ;;  %p2519_p8 = pnand %p1868_p7, %p3062_p1 }
  0x1d   : > { %s100_s24 = ssub.s32 %s2384_s16, %s2515_s22  ;;  %s103_s26 = sadd.s32 1, %s2380_s15 }
  0x1e   : > { %s3101_s23 = scalar_select %p2519_p8, 1, 0 }
  0x1f   : > { %p2525_p9 = scmp.eq.s32.totalorder %s100_s24, 0  ;;  %s3103_s1 = sld [smem:[#allocation35_spill]] }
  0x20   : > { %p2540_p12 = pneg %p2519_p8 }
  0x21   : > { %s3102_s25 = scalar_select %p2525_p9, 1, 0 }
  0x22   : > { %s3104_s12 = scalar_select %p2540_p12, 1, 0 }
  0x25   : > { %s2008_s29 = scalar_lea.hbm %s3103_s1, 128 }
  0x26   : > { %p2009_p11 = scmp.ne.s32.totalorder %s3103_s1, %s2008_s29  ;;  %p2015_p2 = scmp.lt.u32.totalorder %s2008_s29, %s3103_s1 }
  0x28   : > { %p2011_p13 = pnand %p2540_p12, %p2009_p11 }
  0x2a   : > { %p2012_p0 = pneg %p2011_p13 }
  0x2c   : > { %p2017_p3 = pnand %p2015_p2, %p2012_p0 }
  0x2e   : > { %2020 = shalt.err (!%p2017_p3)
}
  0x2f   : > { %s2021_s24 = scalar_lea.vmem %s324_s21, 128  ;;  %p2029_p10 = scmp.lt.s32.totalorder %s324_s21, %s324_s21 }
  0x30   : > { %p2022_p7 = scmp.ne.s32.totalorder %s324_s21, %s2021_s24  ;;  %p2030_p5 = scmp.lt.s32.totalorder %s2021_s24, %s2021_s24 }
  0x32   : > { %p2024_p4 = pnand %p2022_p7, %p2540_p12  ;;  %p2031_p6 = por %p2030_p5, %p2029_p10 }
  0x34   : > { %p2025_p1 = pneg %p2024_p4 }
  0x36   : > { %p2032_p9 = pnand %p2031_p6, %p2025_p1 }
  0x38   : > { %2035 = shalt.err (!%p2032_p9)
}
  0x39   : > { %1874 = dma.hbm_to_vmem [thread:$0]  (!%p2519_p8), %s3103_s1, 128, %s324_s21, [#allocation7]  }
  0x3a   : > { %p3105_p4 = scmp.ne.s32.totalorder %s3102_s25, 0  ;;  %p111_p1 = scmp.eq.s32.totalorder %s2384_s16, 0 }
  0x3b   : > { %p1904_p5 = scmp.lt.s32.totalorder %s2384_s16, 2  ;;  %s2564_s30 = sand.u32 1, %s2384_s16  }
  0x3c   : > { %s2559_s29 = scalar_select %p3105_p4, %s2380_s15, %s103_s26  }
  0x3d   : > { %s2567_s11 = sand.u32 1, %s2380_s15   ;;  %p3107_p6 = scmp.ne.s32.totalorder %s2380_s15, %s2376_s14 }
  0x3e   : > { %3106 = sst [smem:[#allocation34_spill]] %s2559_s29  ;;  %s1663_s13 = sshll.u32 %s2384_s16, 4 }
  0x3f   : > { %p112_p9 = por %p111_p1, %p3107_p6  ;;  %s3108_s3 = sld [smem:[#allocation36_spill]] }
  0x40   : > { %s359_s21 = scalar_lea.vmem [#allocation9], %s2567_s11  ;;  %s2588_s29 = scalar_lea.hbm %s3057_s6, %s1663_s13 }
  0x41   : > { %s366_s25 = sshll.u32 %s359_s21, 4  ;;  %p2581_p10 = pnand %p1904_p5, %p112_p9  ;;  %s2579_s25 = int_to_ptr.vmem [resolvable:$true] %s366_s25 }
  0x42   : > { %s3073_s20 = scalar_lea.sflag [#allocation10], %s2564_s30 }
  0x43   : > { %s3109_s26 = scalar_select %p2581_p10, 1, 0 }
  0x44   : > { %p2595_p13 = pneg %p2581_p10 }
  0x45   : > { %s2576_s27 = scalar_lea.hbm %s3108_s3, %s1663_s13  ;;  %s2041_s10 = scalar_lea.hbm %s3108_s3, 32 }
  0x46   : > { %s2036_s24 = scalar_lea.hbm %s2576_s27, 16  ;;  %p2042_p3 = scmp.lt.u32.totalorder %s2576_s27, %s3108_s3 }
  0x47   : > { %p2037_p11 = scmp.ne.s32.totalorder %s2576_s27, %s2036_s24  ;;  %p2043_p7 = scmp.lt.u32.totalorder %s2041_s10, %s2036_s24 }
  0x48   : > { %s3110_s15 = scalar_select %p2595_p13, 1, 0 }
  0x49   : > { %p2039_p0 = pnand %p2595_p13, %p2037_p11  ;;  %p2044_p4 = por %p2043_p7, %p2042_p3 }
  0x4a   : > { %p2045_p1 = scmp.lt.u32.totalorder %s2036_s24, %s2576_s27 }
  0x4b   : > { %p2040_p2 = pneg %p2039_p0 }
  0x4c   : > { %p2046_p5 = por %p2045_p1, %p2044_p4 }
  0x4e   : > { %p2047_p6 = pnand %p2046_p5, %p2040_p2 }
  0x50   : > { %2050 = shalt.err (!%p2047_p6)
}
  0x51   : > { %s2051_s13 = scalar_lea.vmem %s2579_s25, 16  ;;  %s2387_s22 = smov [#allocation9]  }
  0x52   : > { %p2052_p9 = scmp.ne.s32.totalorder %s2579_s25, %s2051_s13  ;;  %s2056_s21 = sshll.u32 %s2387_s22, 4  ;;  %s2057_s21 = int_to_ptr.vmem [resolvable:$false] %s2056_s21 }
  0x53   : > { %s2058_s1 = scalar_lea.vmem %s2057_s21, 32  ;;  %p2059_p8 = scmp.lt.s32.totalorder %s2579_s25, %s2057_s21 }
  0x54   : > { %p2054_p11 = pnand %p2052_p9, %p2595_p13  ;;  %p2060_p12 = scmp.lt.s32.totalorder %s2058_s1, %s2051_s13 }
  0x56   : > { %p2055_p0 = pneg %p2054_p11  ;;  %p2061_p3 = por %p2060_p12, %p2059_p8 }
  0x58   : > { %p2062_p7 = pnand %p2061_p3, %p2055_p0 }
  0x5a   : > { %2065 = shalt.err (!%p2062_p7)
}
  0x5b   : > { %1884 = dma.hbm_to_vmem [thread:$0]  (!%p2581_p10), %s2576_s27, 16, %s2579_s25, %s3073_s20  }
  0x5c   : > { %s2622_s24 = sshll.u32 %s2567_s11, 4  ;;  %s2625_s28 = sshll.u32 %s2384_s16, 8 }
  0x5d   : > { %s3111_s5 = sld [smem:[#allocation37_spill]]  ;;  %s398_s1 = scalar_lea.vmem [#allocation12], %s2622_s24 }
  0x5e   : > { %s405_s3 = sshll.u32 %s398_s1, 4  ;;  %s3077_s27 = scalar_lea.sflag [#allocation13], %s2564_s30  ;;  %s2634_s3 = int_to_ptr.vmem [resolvable:$true] %s405_s3 }
  0x63   : > { %s2631_s21 = scalar_lea.hbm %s3111_s5, %s2625_s28  ;;  %s2071_s13 = scalar_lea.hbm %s3111_s5, 512 }
  0x64   : > { %s2066_s25 = scalar_lea.hbm %s2631_s21, 256  ;;  %p2072_p4 = scmp.lt.u32.totalorder %s2631_s21, %s3111_s5 }
  0x65   : > { %p2067_p8 = scmp.ne.s32.totalorder %s2631_s21, %s2066_s25  ;;  %p2073_p1 = scmp.lt.u32.totalorder %s2071_s13, %s2066_s25 }
  0x66   : > { %p2075_p6 = scmp.lt.u32.totalorder %s2066_s25, %s2631_s21 }
  0x67   : > { %p2069_p12 = pnand %p2067_p8, %p2595_p13  ;;  %p2074_p5 = por %p2073_p1, %p2072_p4 }
  0x69   : > { %p2070_p2 = pneg %p2069_p12  ;;  %p2076_p9 = por %p2075_p6, %p2074_p5 }
  0x6b   : > { %p2077_p11 = pnand %p2076_p9, %p2070_p2 }
  0x6d   : > { %2080 = shalt.err (!%p2077_p11)
}
  0x6e   : > { %s2081_s1 = scalar_lea.vmem %s2634_s3, 256  ;;  %s2388_s20 = smov [#allocation12]  }
  0x6f   : > { %p2082_p0 = scmp.ne.s32.totalorder %s2634_s3, %s2081_s1  ;;  %s2086_s10 = sshll.u32 %s2388_s20, 4  ;;  %s2087_s10 = int_to_ptr.vmem [resolvable:$false] %s2086_s10 }
  0x70   : > { %s2088_s18 = scalar_lea.vmem %s2087_s10, 512  ;;  %p2089_p8 = scmp.lt.s32.totalorder %s2634_s3, %s2087_s10 }
  0x71   : > { %p2084_p3 = pnand %p2082_p0, %p2595_p13  ;;  %p2090_p12 = scmp.lt.s32.totalorder %s2088_s18, %s2081_s1 }
  0x73   : > { %p2085_p7 = pneg %p2084_p3  ;;  %p2091_p4 = por %p2090_p12, %p2089_p8 }
  0x75   : > { %p2092_p1 = pnand %p2091_p4, %p2085_p7 }
  0x77   : > { %2095 = shalt.err (!%p2092_p1)
}
  0x78   : > { %s2389_s25 = smov 64   ;;  %s2390_s13 = smov 4  }
  0x79   : > { %1890 = dma.hbm_to_vmem [thread:$0]  (!%p2581_p10), %s2631_s21, 256, %s2634_s3, %s3077_s27, %s2389_s25, %s2389_s25, %s2390_s13  }
  0x7a   : > { %s3112_s7 = sld [smem:[#allocation38_spill]]  ;;  %s436_s10 = scalar_lea.vmem [#allocation15], %s2622_s24 }
  0x7b   : > { %s443_s18 = sshll.u32 %s436_s10, 4  ;;  %s433_s5 = scalar_lea.sflag [#allocation16], %s2564_s30  ;;  %s2670_s18 = int_to_ptr.vmem [resolvable:$true] %s443_s18 }
  0x80   : > { %s2667_s20 = scalar_lea.hbm %s3112_s7, %s2625_s28  ;;  %s2101_s22 = scalar_lea.hbm %s3112_s7, 512 }
  0x81   : > { %s2096_s14 = scalar_lea.hbm %s2667_s20, 256  ;;  %p2102_p9 = scmp.lt.u32.totalorder %s2667_s20, %s3112_s7 }
  0x82   : > { %p2097_p2 = scmp.ne.s32.totalorder %s2667_s20, %s2096_s14  ;;  %p2103_p11 = scmp.lt.u32.totalorder %s2101_s22, %s2096_s14 }
  0x83   : > { %p2105_p3 = scmp.lt.u32.totalorder %s2096_s14, %s2667_s20 }
  0x84   : > { %p2099_p5 = pnand %p2097_p2, %p2595_p13  ;;  %p2104_p0 = por %p2103_p11, %p2102_p9 }
  0x86   : > { %p2100_p6 = pneg %p2099_p5  ;;  %p2106_p7 = por %p2105_p3, %p2104_p0 }
  0x88   : > { %p2107_p8 = pnand %p2106_p7, %p2100_p6 }
  0x8a   : > { %2110 = shalt.err (!%p2107_p8)
}
  0x8b   : > { %s2111_s10 = scalar_lea.vmem %s2670_s18, 256  ;;  %s2391_s3 = smov [#allocation15]  }
  0x8c   : > { %p2112_p12 = scmp.ne.s32.totalorder %s2670_s18, %s2111_s10  ;;  %s2116_s21 = sshll.u32 %s2391_s3, 4  ;;  %s2117_s21 = int_to_ptr.vmem [resolvable:$false] %s2116_s21 }
  0x8d   : > { %s2118_s27 = scalar_lea.vmem %s2117_s21, 512  ;;  %p2119_p2 = scmp.lt.s32.totalorder %s2670_s18, %s2117_s21 }
  0x8e   : > { %p2114_p4 = pnand %p2112_p12, %p2595_p13  ;;  %p2120_p5 = scmp.lt.s32.totalorder %s2118_s27, %s2111_s10 }
  0x90   : > { %p2115_p1 = pneg %p2114_p4  ;;  %p2121_p9 = por %p2120_p5, %p2119_p2 }
  0x92   : > { %p2122_p11 = pnand %p2121_p9, %p2115_p1 }
  0x94   : > { %2125 = shalt.err (!%p2122_p11)
}
  0x95   : > { %1896 = dma.hbm_to_vmem [thread:$0]  (!%p2581_p10), %s2667_s20, 256, %s2670_s18, %s433_s5, %s2389_s25, %s2389_s25, %s2390_s13  }
  0x96   : > { %s2392_s14 = smov [#allocation3]   ;;  %s2393_s1 = smov [#allocation8]  }
  0x97   : > { %s312_s22 = sshll.u32 %s2392_s14, 4  ;;  %s334_s3 = sshll.u32 %s2393_s1, 4  ;;  %s313_s22 = int_to_ptr.vmem [resolvable:$true] %s312_s22  ;;  %s335_s3 = int_to_ptr.vmem [resolvable:$true] %s334_s3 }
  0x98   : > { %s2126_s27 = scalar_lea.hbm %s3051_s0, 128  ;;  %p3113_p0 = scmp.ne.s32.totalorder %s3104_s12, 0 }
  0x99   : > { %p2127_p6 = scmp.ne.s32.totalorder %s3051_s0, %s2126_s27  ;;  %p2133_p8 = scmp.lt.u32.totalorder %s2126_s27, %s3051_s0 }
  0x9b   : > { %p2129_p3 = pnand %p2127_p6, %p3113_p0 }
  0x9d   : > { %p2130_p7 = pneg %p2129_p3 }
  0x9f   : > { %p2135_p12 = pnand %p2133_p8, %p2130_p7 }
  0xa1   : > { %2138 = shalt.err (!%p2135_p12)
}
  0xa2   : > { %s2139_s20 = scalar_lea.vmem %s313_s22, 128  ;;  %p2147_p5 = scmp.lt.s32.totalorder %s313_s22, %s313_s22 }
  0xa3   : > { %p2140_p4 = scmp.ne.s32.totalorder %s313_s22, %s2139_s20  ;;  %p2148_p9 = scmp.lt.s32.totalorder %s2139_s20, %s2139_s20 }
  0xa5   : > { %p2142_p1 = pnand %p2140_p4, %p3113_p0  ;;  %p2149_p11 = por %p2148_p9, %p2147_p5 }
  0xa7   : > { %p2143_p2 = pneg %p2142_p1 }
  0xa9   : > { %p2150_p10 = pnand %p2149_p11, %p2143_p2 }
  0xab   : > { %2153 = shalt.err (!%p2150_p10)
}
  0xac   : > { %p3114_p6 = scmp.ne.s32.totalorder %s3101_s23, 0  ;;  %s2154_s18 = scalar_lea.hbm %s3053_s2, 128 }
  0xad   : > { %p2155_p3 = scmp.ne.s32.totalorder %s3053_s2, %s2154_s18  ;;  %p2161_p10 = scmp.lt.u32.totalorder %s2154_s18, %s3053_s2 }
  0xae   : > { %1871 = dma.hbm_to_vmem [thread:$0]  (!%p3114_p6), %s3051_s0, 128, %s313_s22, [#allocation4]  }
  0xaf   : > { %p2157_p7 = pnand %p2155_p3, %p3113_p0 }
  0xb1   : > { %p2158_p8 = pneg %p2157_p7 }
  0xb3   : > { %p2163_p12 = pnand %p2161_p10, %p2158_p8 }
  0xb5   : > { %2166 = shalt.err (!%p2163_p12)
}
  0xb6   : > { %s2167_s27 = scalar_lea.vmem %s335_s3, 128  ;;  %p2175_p5 = scmp.lt.s32.totalorder %s335_s3, %s335_s3 }
  0xb7   : > { %p2168_p4 = scmp.ne.s32.totalorder %s335_s3, %s2167_s27  ;;  %p2176_p9 = scmp.lt.s32.totalorder %s2167_s27, %s2167_s27 }
  0xb9   : > { %p2170_p1 = pnand %p2168_p4, %p3113_p0  ;;  %p2177_p11 = por %p2176_p9, %p2175_p5 }
  0xbb   : > { %p2171_p2 = pneg %p2170_p1 }
  0xbd   : > { %p2178_p13 = pnand %p2177_p11, %p2171_p2 }
  0xbf   : > { %2181 = shalt.err (!%p2178_p13)
}
  0xc0   : > { %1877 = dma.hbm_to_vmem [thread:$0]  (!%p3114_p6), %s3053_s2, 128, %s335_s3, [#allocation7]  }
  0xc1   : > { %s2394_s7 = smov [#allocation18]   ;;  %s2739_s18 = scalar_lea.hbm %s3055_s4, %s2625_s28 }
  0xc2   : > { %s345_s17 = sshll.u32 %s2394_s7, 4  ;;  %s2182_s10 = scalar_lea.hbm %s3060_s9, 16  ;;  %s346_s17 = int_to_ptr.vmem [resolvable:$true] %s345_s17 }
  0xc3   : > { %p2183_p13 = scmp.ne.s32.totalorder %s3060_s9, %s2182_s10  ;;  %p2189_p8 = scmp.lt.u32.totalorder %s2182_s10, %s3060_s9 }
  0xc5   : > { %p2185_p3 = pnand %p2183_p13, %p3113_p0 }
  0xc7   : > { %p2186_p7 = pneg %p2185_p3 }
  0xc9   : > { %p2191_p10 = pnand %p2189_p8, %p2186_p7 }
  0xcb   : > { %2194 = shalt.err (!%p2191_p10)
}
  0xcc   : > { %s2195_s20 = scalar_lea.vmem %s346_s17, 16  ;;  %s2202_s28 = scalar_lea.vmem %s346_s17, 32 }
  0xcd   : > { %p2196_p12 = scmp.ne.s32.totalorder %s346_s17, %s2195_s20  ;;  %p2203_p2 = scmp.lt.s32.totalorder %s346_s17, %s346_s17 }
  0xce   : > { %p2204_p5 = scmp.lt.s32.totalorder %s2202_s28, %s2195_s20 }
  0xcf   : > { %p2198_p4 = pnand %p2196_p12, %p3113_p0 }
  0xd0   : > { %p2205_p9 = por %p2204_p5, %p2203_p2 }
  0xd1   : > { %p2199_p1 = pneg %p2198_p4 }
  0xd3   : > { %p2206_p11 = pnand %p2205_p9, %p2199_p1 }
  0xd5   : > { %2209 = shalt.err (!%p2206_p11)
}
  0xd6   : > { %1880 = dma.hbm_to_vmem [thread:$0]  (!%p3114_p6), %s3060_s9, 16, %s346_s17, [#allocation19]  }
  0xd7   : > { %s377_s12 = scalar_lea.vmem [#allocation11], %s2622_s24  ;;  %s418_s14 = scalar_lea.vmem [#allocation14], %s2567_s11 }
  0xd8   : > { %s384_s19 = sshll.u32 %s377_s12, 4  ;;  %s2763_s1 = sshll.u32 %s418_s14, 4  ;;  %s2760_s19 = int_to_ptr.vmem [resolvable:$true] %s384_s19  ;;  %s426_s1 = int_to_ptr.vmem [resolvable:$true] %s2763_s1 }
  0xd9   : > { %s2210_s10 = scalar_lea.hbm %s2739_s18, 256  ;;  %p3115_p13 = scmp.ne.s32.totalorder %s3110_s15, 0 }
  0xda   : > { %p2211_p0 = scmp.ne.s32.totalorder %s2739_s18, %s2210_s10  ;;  %s2215_s27 = scalar_lea.hbm %s3055_s4, 512 }
  0xdb   : > { %p2216_p6 = scmp.lt.u32.totalorder %s2739_s18, %s3055_s4  ;;  %p2217_p8 = scmp.lt.u32.totalorder %s2215_s27, %s2210_s10 }
  0xdc   : > { %p2213_p3 = pnand %p2211_p0, %p3115_p13  ;;  %p2219_p12 = scmp.lt.u32.totalorder %s2210_s10, %s2739_s18 }
  0xdd   : > { %p2218_p10 = por %p2217_p8, %p2216_p6 }
  0xde   : > { %p2214_p7 = pneg %p2213_p3 }
  0xdf   : > { %p2220_p4 = por %p2219_p12, %p2218_p10 }
  0xe1   : > { %p2221_p1 = pnand %p2220_p4, %p2214_p7 }
  0xe3   : > { %2224 = shalt.err (!%p2221_p1)
}
  0xe4   : > { %s2225_s24 = scalar_lea.vmem %s2760_s19, 256  ;;  %s2395_s17 = smov [#allocation11]  }
  0xe5   : > { %p2226_p2 = scmp.ne.s32.totalorder %s2760_s19, %s2225_s24  ;;  %s2230_s20 = sshll.u32 %s2395_s17, 4  ;;  %s2231_s20 = int_to_ptr.vmem [resolvable:$false] %s2230_s20 }
  0xe6   : > { %s2232_s28 = scalar_lea.vmem %s2231_s20, 512  ;;  %p2233_p11 = scmp.lt.s32.totalorder %s2760_s19, %s2231_s20 }
  0xe7   : > { %p2228_p5 = pnand %p2226_p2, %p3115_p13  ;;  %p2234_p0 = scmp.lt.s32.totalorder %s2232_s28, %s2225_s24 }
  0xe9   : > { %p2229_p9 = pneg %p2228_p5  ;;  %p2235_p3 = por %p2234_p0, %p2233_p11 }
  0xeb   : > { %p2236_p6 = pnand %p2235_p3, %p2229_p9 }
  0xed   : > { %2239 = shalt.err (!%p2236_p6)
}
  0xee   : > { %p3116_p7 = scmp.ne.s32.totalorder %s3109_s26, 0  ;;  %s3117_s7 = scalar_lea.sflag [#allocation10], %s2564_s30 }
  0xef   : > { %s2240_s8 = scalar_lea.hbm %s2588_s29, 16  ;;  %s2245_s10 = scalar_lea.hbm %s3057_s6, 32 }
  0xf0   : > { %1887 = dma.hbm_to_vmem [thread:$0]  (!%p3116_p7), %s2739_s18, 256, %s2760_s19, %s3117_s7, %s2389_s25, %s2389_s25, %s2390_s13  }
  0xf1   : > { %p2241_p8 = scmp.ne.s32.totalorder %s2588_s29, %s2240_s8  ;;  %p2246_p4 = scmp.lt.u32.totalorder %s2588_s29, %s3057_s6 }
  0xf2   : > { %p2247_p1 = scmp.lt.u32.totalorder %s2245_s10, %s2240_s8  ;;  %p2249_p5 = scmp.lt.u32.totalorder %s2240_s8, %s2588_s29 }
  0xf3   : > { %p2243_p10 = pnand %p2241_p8, %p3115_p13 }
  0xf4   : > { %p2248_p2 = por %p2247_p1, %p2246_p4 }
  0xf5   : > { %p2244_p12 = pneg %p2243_p10 }
  0xf6   : > { %p2250_p9 = por %p2249_p5, %p2248_p2 }
  0xf8   : > { %p2251_p11 = pnand %p2250_p9, %p2244_p12 }
  0xfa   : > { %2254 = shalt.err (!%p2251_p11)
}
  0xfb   : > { %s2255_s18 = scalar_lea.vmem %s426_s1, 16  ;;  %s2396_s19 = smov [#allocation14]  }
  0xfc   : > { %p2256_p0 = scmp.ne.s32.totalorder %s426_s1, %s2255_s18  ;;  %s2260_s27 = sshll.u32 %s2396_s19, 4  ;;  %s2261_s27 = int_to_ptr.vmem [resolvable:$false] %s2260_s27 }
  0xfd   : > { %s2262_s3 = scalar_lea.vmem %s2261_s27, 32  ;;  %p2263_p8 = scmp.lt.s32.totalorder %s426_s1, %s2261_s27 }
  0xfe   : > { %p2258_p3 = pnand %p2256_p0, %p3115_p13  ;;  %p2264_p10 = scmp.lt.s32.totalorder %s2262_s3, %s2255_s18 }
 0x100   : > { %p2259_p6 = pneg %p2258_p3  ;;  %p2265_p7 = por %p2264_p10, %p2263_p8 }
 0x102   : > { %p2266_p1 = pnand %p2265_p7, %p2259_p6 }
 0x104   : > { %2269 = shalt.err (!%p2266_p1)
}
 0x105   : > { %p3118_p4 = scmp.ne.s32.totalorder %s3109_s26, 0  ;;  %s3119_s22 = scalar_lea.sflag [#allocation13], %s2564_s30 }
 0x106   : > { %s1721_s24 = sshll.u32 %s2384_s16, 9  ;;  %s3120_s17 = sshll.u32 %s2567_s11, 5 }
 0x107   : > { %1893 = dma.hbm_to_vmem [thread:$0]  (!%p3118_p4), %s2588_s29, 16, %s426_s1, %s3119_s22  }
 0x108   : > { %s457_s20 = scalar_lea.vmem [#allocation17], %s3120_s17  ;;  %s3121_s12 = sld [smem:[#allocation39_spill]] }
 0x109   : > { %s464_s28 = sshll.u32 %s457_s20, 4  ;;  %s2819_s28 = int_to_ptr.vmem [resolvable:$true] %s464_s28 }
 0x10e   : > { %s2817_s14 = scalar_lea.hbm %s3121_s12, %s1721_s24  ;;  %s2275_s11 = scalar_lea.hbm %s3121_s12, 1024 }
 0x10f   : > { %s2270_s10 = scalar_lea.hbm %s2817_s14, 512  ;;  %p2276_p5 = scmp.lt.u32.totalorder %s2817_s14, %s3121_s12 }
 0x110   : > { %p2271_p7 = scmp.ne.s32.totalorder %s2817_s14, %s2270_s10  ;;  %p2277_p9 = scmp.lt.u32.totalorder %s2275_s11, %s2270_s10 }
 0x111   : > { %p2279_p0 = scmp.lt.u32.totalorder %s2270_s10, %s2817_s14 }
 0x112   : > { %p2273_p12 = pnand %p2271_p7, %p3115_p13  ;;  %p2278_p11 = por %p2277_p9, %p2276_p5 }
 0x114   : > { %p2274_p2 = pneg %p2273_p12  ;;  %p2280_p3 = por %p2279_p0, %p2278_p11 }
 0x116   : > { %p2281_p6 = pnand %p2280_p3, %p2274_p2 }
 0x118   : > { %2284 = shalt.err (!%p2281_p6)
}
 0x119   : > { %s2285_s21 = scalar_lea.vmem %s2819_s28, 512  ;;  %s2397_s18 = smov [#allocation17]  }
 0x11a   : > { %p2286_p8 = scmp.ne.s32.totalorder %s2819_s28, %s2285_s21  ;;  %s2290_s19 = sshll.u32 %s2397_s18, 4  ;;  %s2291_s19 = int_to_ptr.vmem [resolvable:$false] %s2290_s19 }
 0x11b   : > { %s2292_s27 = scalar_lea.vmem %s2291_s19, 1024  ;;  %p2293_p7 = scmp.lt.s32.totalorder %s2819_s28, %s2291_s19 }
 0x11c   : > { %p2288_p10 = pnand %p2286_p8, %p3115_p13  ;;  %p2294_p12 = scmp.lt.s32.totalorder %s2292_s27, %s2285_s21 }
 0x11e   : > { %p2289_p1 = pneg %p2288_p10  ;;  %p2295_p5 = por %p2294_p12, %p2293_p7 }
 0x120   : > { %p2296_p9 = pnand %p2295_p5, %p2289_p1 }
 0x122   : > { %2299 = shalt.err (!%p2296_p9)
}
 0x123   : > { %1899 = dma.hbm_to_vmem [thread:$0]  (!%p3118_p4), %s2817_s14, 512, %s2819_s28, %s433_s5, %s2389_s25, %s2389_s25, %s2390_s13  }
 0x124   : > { %s3122_s15 = sld [smem:[#allocation32_spill]] }
 0x12a   : > { %p3123_p13 = scmp.ne.s32.totalorder %s3122_s15, 0 }
 0x12b   : > { %s3124_s3 = sld [smem:[#allocation30_spill]] (!%p3123_p13) }
 0x12c   : > { %476 = sbr.rel (%p3123_p13) target bundleno = 3134 (0xc3e), region = 60 }
 0x131   : > { %p3125_p2 = scmp.eq.s32.totalorder (!%p3123_p13), %s3124_s3, 0 }
 0x133   : > { %2343 = dma.done.wait (%p3125_p2), [#allocation4], 128   ;;  %p3126_p11 = pmov %p3125_p2 }
 0x134   : > { %p3127_p0 = pmov %p3125_p2 }
 0x135   : > { %2345 = vsyncadd (%p3126_p11), [#allocation4], 4294967168 }
 0x136   : > { %2347 = dma.done.wait (%p3127_p0), [#allocation7], 256   ;;  %p3128_p3 = pmov %p3127_p0 }
 0x137   : > { %s3129_s30 = sld [smem:[#allocation28_spill]]  ;;  %s3130_s26 = sld [smem:[#allocation31_spill]] }
 0x138   : > { %2349 = vsyncadd (%p3128_p3), [#allocation7], 4294967040  ;;  %s490_s22 = sand.u32 1, %s3124_s3  }
 0x139   : > { %s491_s25 = scalar_lea.sflag [#allocation10], %s490_s22 }
 0x13d   : > { %s2859_s5 = sand.u32 1, %s3129_s30   ;;  %p3131_p4 = scmp.ne.s32.totalorder %s3130_s26, 0 }
 0x13e   : > { %s493_s13 = scalar_lea.vmem [#allocation9], %s2859_s5 }
 0x13f   : > { %2351 = dma.done.wait (%p3131_p4), %s491_s25, 272  }
 0x140   : > { %2353 = vsyncadd (%p3131_p4), %s491_s25, 4294967024  ;;  %s2867_s24 = sshll.u32 %s2859_s5, 4  ;;  %s508_s20 = scalar_lea.sflag [#allocation13], %s490_s22 }
 0x141   : > { %s502_s17 = scalar_lea.vmem [#allocation11], %s2867_s24  ;;  %s511_s28 = scalar_lea.vmem [#allocation12], %s2867_s24 }
 0x142   : > { %2355 = dma.done.wait (%p3131_p4), %s508_s20, 272  }
 0x143   : > { %2357 = vsyncadd (%p3131_p4), %s508_s20, 4294967024  ;;  %s519_s7 = scalar_lea.vmem [#allocation14], %s2859_s5  ;;  %s525_s8 = scalar_lea.sflag [#allocation16], %s490_s22 }
 0x144   : > { %s528_s14 = scalar_lea.vmem [#allocation15], %s2867_s24 }
 0x145   : > { %2359 = dma.done.wait (%p3131_p4), %s525_s8, 768  }
 0x146   : > { %2361 = vsyncadd (%p3131_p4), %s525_s8, 4294966528  ;;  %s1684_s10 = sshll.u32 %s2859_s5, 5  ;;  %p3132_p6 = pmov %p3127_p0 }
 0x147   : > { %s2882_s16 = scalar_lea.vmem [#allocation17], %s1684_s10 }
 0x148   : > { %2363 = dma.done.wait (%p3132_p6), [#allocation19], 16   ;;  %p3133_p8 = pmov %p3127_p0 }
 0x149   : > { %p3134_p10 = scmp.ne.s32.totalorder %s3124_s3, 0 }
 0x14a   : > { %2365 = vsyncadd (%p3133_p8), [#allocation19], 4294967280  ;;  %v601_v0 = vld [vmem:[#allocation3] sm:$0xff] (!%p3134_p10)  ;;  %vm602_vm0 = vcmask (!%p3134_p10), 261120  }
 0x14b   : > { %600 = sbr.rel (%p3134_p10) target bundleno = 338 (0x152), region = 104  ;;  %603 = vst.msk [vmem:[#allocation2] sm:$0xff] (!%p3134_p10), %vm602_vm0, %v601_v0 }
 0x152 PF: > { %v2890_v1 = vld [vmem:[#allocation2] sm:$0xff]  ;;  %vm607_vm1 = vcmask 261120   ;;  %v2398_v5 = vmov 0.0   ;;  %vm2399_vm2 = vmmov 0   ;;  %v683_v15 = vld [vmem:[#allocation6] sm:$0xff]  ;;  %s2400_s29 = smov 100   ;;  %v735_v61 = vlaneseq }
 0x153   : > { %v606_v2 = vmul.f32 %v2890_v1, %v2890_v1  ;;  %v1972_v4 = vld [vmem:[%s502_s17] sm:$0xff]   ;;  %1752 = vmatprep.subr.bf16.mxu0 %v2398_v5  ;;  %1756 = vmatprep.mubr.msk.bf16.mxu0 %vm2399_vm2, %v2398_v5  ;;  %v1973_v6 = vld [vmem:[%s502_s17 + $0x8] sm:$0xff]   ;;  %s2401_s11 = smov 92   ;;  %s2402_s1 = smov 32   ;;  %vm695_vm3 = vcmask 31744   ;;  %vm697_vm4 = vcmask 64512  }
 0x154   : > { %1753 = vmatpush3.bf16.msra.mxu0 %v1972_v4  ;;  %1760 = vmatprep.subr.bf16.mxu1 %v2398_v5  ;;  %v1687_v11 = vld [vmem:[%s493_s13] ss:$0 sm:$0xff]  ;;  %vm699_vm5 = vcmask 97280   ;;  %vm701_vm6 = vcmask 130048   ;;  %vm703_vm7 = vcmask 162816   ;;  %vm705_vm8 = vcmask 195584  }
 0x155   : > { %v608_v3 = vsel %vm607_vm1, %v606_v2, 0.0  ;;  %1754 = vmatprep.subr.bf16.mxu0 %v2398_v5  ;;  %1762 = vmatprep.mubr.msk.bf16.mxu1 %vm2399_vm2, %v2398_v5  ;;  %vm707_vm9 = vcmask 228352   ;;  %v684_v29 = vld [vmem:[#allocation8] sm:$0xff]  ;;  %s2403_s23 = smov 124   ;;  %s2404_s21 = smov 4   ;;  %v736_v62 = vshrl.u32 %v735_v61, 7 }
 0x156   : > { %609 = vadd.xlane.f32.xlu0 %v608_v3  ;;  %s2405_s18 = smov 96   ;;  %s2406_s19 = smov 88   ;;  %v738_v63 = vand.u32 127, %v735_v61  ;;  %v2412_v2 = vmov -1e+30   ;;  %vm813_vm11 = vcmask 1043456  }
 0x157   : > { %s2407_s27 = smov 80   ;;  %s2408_s15 = smov 72   ;;  %vm1391_vm12 = vcmask 523264  }
 0x158   : > { %1755 = vmatpush3.bf16.msra.mxu0 %v1973_v6  ;;  %s2409_s3 = smov 120   ;;  %s2410_s30 = smov 112   ;;  %vm739_vm10 = vcmp.le.s32.totalorder %v738_v63, %v736_v62 }
 0x159   : > { %1766 = vmatprep.subr.bf16.mxu0 %v2398_v5  ;;  %s2411_s26 = smov 104   ;;  %v740_v3 = vsel %vm739_vm10, 0.0, %v2412_v2  ;;  %s2413_s22 = smov 56  }
 0x15a   : > { %s2414_s25 = smov 64   ;;  %s2415_s13 = smov 40  }
 0x15b   : > { %s2416_s17 = smov 48   ;;  %s2417_s20 = smov 8  }
 0x15c   : > { %s2418_s8 = smov 16   ;;  %s2419_s10 = smov 24  }
 0x15d   : > { %s3135_s5 = sld [smem:[#allocation30_spill]] }
 0x163   : > { %p1712_p1 = scmp.ne.s32.totalorder %s3135_s5, 1 }
 0x1e3   : > { %v610_v7 = vpop.xlane.xlu0 %609 }
 0x1e4   : > { %v612_v8 = vmul.f32 0.03125, %v610_v7 }
 0x1e6   : > { %v613_v9 = vadd.f32 1e-06, %v612_v8 }
 0x1e8   : > { %1982 = vrsqrt.f32 %v613_v9 }
 0x1f2   : > { %v1983_v10 = vpop.eup %1982 }
 0x1f3   : > { %v615_v12 = vmul.f32 %v1983_v10, %v2890_v1 }
 0x1f5   : > { %v622_v13 = vmul.f32 %v1687_v11, %v615_v12 }
 0x1f7   : > { %v623_v14 = vpack.c.bf16 %v622_v13, %v622_v13 }
 0x1f9   : > { %1757 = vmatmul.mubr.msk.bf16.vlgmr.msra.gmra.mrb[0].mxu0 %vm607_vm1, %v623_v14 }
 0x1fa   : > { %1768 = vmatprep.mubr.msk.bf16.mxu0 %vm2399_vm2, %v2398_v5 }
 0x2cc   : > { %v2909_v16 = vpop.f32.mrb[0].mxu0 }
 0x2cd   : > { %719 = vrot.lane.b32.xlu1 %v2909_v16, %s2400_s29  ;;  %v1758_v17 = vpop.f32.mrb[1].mxu0  ;;  %v685_v18 = vsub.f32 0.0, %v2909_v16  ;;  %v686_v19 = vmul.f32 %v683_v15, %v2909_v16 }
 0x2ce   : > { %v680_v20 = vpop.f32.mrb[2].mxu0 }
 0x2cf   : > { %716 = vrot.lane.b32.xlu0 %v685_v18, %s2401_s11  ;;  %v1759_v21 = vpop.f32.mrb[3].mxu0 }
 0x2d1   : > { %712 = vrot.lane.b32.xlu1 %v683_v15, %s2402_s1 }
 0x33f   : > { %v720_v22 = vpop.permute.xlu1 %719 }
 0x341   : > { %v717_v23 = vpop.permute.xlu0 %716 }
 0x342   : > { %v722_v24 = vsel %vm695_vm3, %v717_v23, %v720_v22 }
 0x343   : > { %v723_v25 = vsel %vm697_vm4, %v722_v24, %v717_v23  ;;  %v713_v33 = vpop.permute.xlu1 %712 }
 0x344   : > { %v724_v26 = vsel %vm699_vm5, %v723_v25, %v720_v22  ;;  %v715_v34 = vmul.f32 %v713_v33, %v2909_v16 }
 0x345   : > { %v725_v27 = vsel %vm701_vm6, %v724_v26, %v717_v23 }
 0x346   : > { %v726_v28 = vsel %vm703_vm7, %v725_v27, %v720_v22 }
 0x347   : > { %v727_v30 = vsel %vm705_vm8, %v726_v28, %v717_v23 }
 0x348   : > { %v728_v31 = vsel %vm707_vm9, %v727_v30, %v720_v22 }
 0x349   : > { %v729_v32 = vmul.f32 %v728_v31, %v684_v29 }
 0x34b   : > { %731 = vrot.lane.b32.xlu1 %v729_v32, %s2402_s1 }
 0x34f   : > { %688 = vrot.lane.b32.xlu1 %v685_v18, %s2403_s23 }
 0x353   : > { %692 = vrot.lane.b32.xlu1 %v2909_v16, %s2404_s21 }
 0x3bd   : > { %v732_v35 = vpop.permute.xlu1 %731 }
 0x3be   : > { %v734_v36 = vadd.f32 %v732_v35, %v715_v34 }
 0x3c0   : > { %v742_v37 = vpack.c.bf16 %v734_v36, %v734_v36 }
 0x3c1   : > { %v689_v38 = vpop.permute.xlu1 %688 }
 0x3c2   : > { %745 = vrot.lane.b32.xlu1 %v742_v37, %s2405_s18 }
 0x3c5   : > { %v693_v39 = vpop.permute.xlu1 %692 }
 0x3c6   : > { %v696_v40 = vsel %vm695_vm3, %v689_v38, %v693_v39  ;;  %860 = vrot.lane.b32.xlu1 %v742_v37, %s2406_s19 }
 0x3c7   : > { %v698_v41 = vsel %vm697_vm4, %v696_v40, %v689_v38 }
 0x3c8   : > { %v700_v42 = vsel %vm699_vm5, %v698_v41, %v693_v39 }
 0x3c9   : > { %v702_v43 = vsel %vm701_vm6, %v700_v42, %v689_v38 }
 0x3ca   : > { %v704_v44 = vsel %vm703_vm7, %v702_v43, %v693_v39  ;;  %972 = vrot.lane.b32.xlu1 %v742_v37, %s2407_s27 }
 0x3cb   : > { %v706_v45 = vsel %vm705_vm8, %v704_v44, %v689_v38 }
 0x3cc   : > { %v708_v46 = vsel %vm707_vm9, %v706_v45, %v693_v39 }
 0x3cd   : > { %v709_v47 = vmul.f32 %v708_v46, %v684_v29 }
 0x3ce   : > { %1084 = vrot.lane.b32.xlu1 %v742_v37, %s2408_s15 }
 0x3cf   : > { %v710_v48 = vadd.f32 %v709_v47, %v686_v19 }
 0x3d1   : > { %v741_v49 = vpack.c.bf16 %v710_v48, %v710_v48  ;;  %v743_v48 = vpack.c.bf16 %v2909_v16, %v2909_v16 }
 0x3d3   : > { %858 = vrot.lane.b32.xlu0 %v741_v49, %s2409_s3 }
 0x3d7   : > { %970 = vrot.lane.b32.xlu0 %v741_v49, %s2410_s30 }
 0x3db   : > { %1082 = vrot.lane.b32.xlu0 %v741_v49, %s2411_s26 }
 0x434   : > { %v746_v50 = vpop.permute.xlu1 %745 }
 0x435   : > { %v751_v51 = vsel %vm697_vm4, %v746_v50, 0 }
 0x436   : > { %1761 = vmatpush3.bf16.xpose.msra.mxu1 %v751_v51 }
 0x437   : > { %1772 = vmatprep.subr.bf16.mxu1 %v2398_v5 }
 0x438   : > { %v861_v52 = vpop.permute.xlu1 %860 }
 0x439   : > { %v866_v53 = vsel %vm697_vm4, %v861_v52, 0 }
 0x43c   : > { %v973_v54 = vpop.permute.xlu1 %972 }
 0x43d   : > { %1763 = vmatmul.mubr.msk.bf16.vlgmr.msra.gmra.mrb[0].mxu1 %vm697_vm4, %v741_v49  ;;  %v978_v56 = vsel %vm697_vm4, %v973_v54, 0 }
 0x43e   : > { %1773 = vmatpush3.bf16.xpose.msra.mxu1 %v866_v53  ;;  %1774 = vmatprep.mubr.msk.bf16.mxu1 %vm2399_vm2, %v2398_v5 }
 0x43f   : > { %1784 = vmatprep.subr.bf16.mxu1 %v2398_v5 }
 0x440   : > { %v1085_v57 = vpop.permute.xlu1 %1084 }
 0x441   : > { %v1090_v59 = vsel %vm697_vm4, %v1085_v57, 0 }
 0x445   : > { %v859_v55 = vpop.permute.xlu0 %858 }
 0x446   : > { %1775 = vmatmul.mubr.msk.bf16.vlgmr.msra.gmra.mrb[4].mxu1 %vm697_vm4, %v859_v55 }
 0x447   : > { %1785 = vmatpush3.bf16.xpose.msra.mxu1 %v978_v56  ;;  %1786 = vmatprep.mubr.msk.bf16.mxu1 %vm2399_vm2, %v2398_v5 }
 0x448   : > { %1796 = vmatprep.subr.bf16.mxu1 %v2398_v5 }
 0x449   : > { %v971_v58 = vpop.permute.xlu0 %970 }
 0x44d   : > { %v1083_v60 = vpop.permute.xlu0 %1082 }
 0x44e   : > { %1787 = vmatmul.mubr.msk.bf16.vlgmr.msra.gmra.mrb[8].mxu1 %vm697_vm4, %v971_v58 }
 0x44f   : > { %1797 = vmatpush3.bf16.xpose.msra.mxu1 %v1090_v59  ;;  %1798 = vmatprep.mubr.msk.bf16.mxu1 %vm2399_vm2, %v2398_v5 }
 0x450   : > { %1808 = vmatprep.subr.bf16.mxu1 %v2398_v5 }
 0x456   : > { %1799 = vmatmul.mubr.msk.bf16.vlgmr.msra.gmra.mrb[12].mxu1 %vm697_vm4, %v1083_v60 }
 0x457   : > { %1812 = vmatprep.mubr.msk.bf16.mxu1 %vm2399_vm2, %v2398_v5 }
 0x510   : > { %v787_v0 = vpop.f32.mrb[0].mxu1 }
 0x511   : > { %v793_v4 = vmul.f32 0.35355338, %v787_v0  ;;  %v1764_v6 = vpop.f32.mrb[1].mxu1 }
 0x512   : > { %v790_v7 = vpop.f32.mrb[2].mxu1 }
 0x513   : > { %v1765_v8 = vpop.f32.mrb[3].mxu1  ;;  %v794_v9 = vadd.f32 %v793_v4, %v740_v3 }
 0x515   : > { %v795_v10 = vsel %vm697_vm4, %v794_v9, -inf }
 0x516   : > { %796 = vmax.xlane.f32.xlu1 %v795_v10 }
 0x519   : > { %v902_v11 = vpop.f32.mrb[4].mxu1 }
 0x51a   : > { %v908_v12 = vmul.f32 0.35355338, %v902_v11  ;;  %v1776_v13 = vpop.f32.mrb[5].mxu1 }
 0x51b   : > { %v905_v14 = vpop.f32.mrb[6].mxu1 }
 0x51c   : > { %v1777_v15 = vpop.f32.mrb[7].mxu1  ;;  %v909_v17 = vadd.f32 %v908_v12, %v740_v3 }
 0x51e   : > { %v910_v18 = vsel %vm697_vm4, %v909_v17, -inf }
 0x51f   : > { %911 = vmax.xlane.f32.xlu0 %v910_v18 }
 0x521   : > { %v1014_v19 = vpop.f32.mrb[8].mxu1 }
 0x522   : > { %v1020_v20 = vmul.f32 0.35355338, %v1014_v19  ;;  %v1788_v21 = vpop.f32.mrb[9].mxu1 }
 0x523   : > { %v1017_v22 = vpop.f32.mrb[10].mxu1 }
 0x524   : > { %v1789_v23 = vpop.f32.mrb[11].mxu1  ;;  %v1021_v24 = vadd.f32 %v1020_v20, %v740_v3 }
 0x526   : > { %v1022_v25 = vsel %vm697_vm4, %v1021_v24, -inf }
 0x527   : > { %1023 = vmax.xlane.f32.xlu0 %v1022_v25  ;;  %v1975_v25 = vld [vmem:[%s511_s28 + $0x8] sm:$0xff]  }
 0x529   : > { %v1126_v26 = vpop.f32.mrb[12].mxu1 }
 0x52a   : > { %v1132_v27 = vmul.f32 0.35355338, %v1126_v26  ;;  %v1800_v28 = vpop.f32.mrb[13].mxu1 }
 0x52b   : > { %v1129_v29 = vpop.f32.mrb[14].mxu1 }
 0x52c   : > { %v1801_v30 = vpop.f32.mrb[15].mxu1  ;;  %v1133_v31 = vadd.f32 %v1132_v27, %v740_v3 }
 0x52e   : > { %v1134_v32 = vsel %vm697_vm4, %v1133_v31, -inf }
 0x52f   : > { %1135 = vmax.xlane.f32.xlu1 %v1134_v32 }
 0x5a3   : > { %v797_v33 = vpop.xlane.xlu1 %796 }
 0x5a4   : > { %v798_v34 = vsub.f32 %v794_v9, %v797_v33 }
 0x5a6   : > { %v799_v35 = vmul.f32 1.442695, %v798_v34 }
 0x5a8   : > { %1984 = vpow2.f32 %v799_v35 }
 0x5ac   : > { %v912_v36 = vpop.xlane.xlu0 %911 }
 0x5ad   : > { %v913_v37 = vsub.f32 %v909_v17, %v912_v36 }
 0x5af   : > { %v914_v38 = vmul.f32 1.442695, %v913_v37 }
 0x5b1   : > { %1986 = vpow2.f32 %v914_v38 }
 0x5b2   : > { %v1985_v39 = vpop.eup %1984 }
 0x5b3   : > { %v801_v40 = vsel %vm697_vm4, %v1985_v39, 0.0 }
 0x5b4   : > { %v1024_v41 = vpop.xlane.xlu0 %1023  ;;  %802 = vadd.xlane.f32.xlu0 %v801_v40 }
 0x5b5   : > { %v1025_v42 = vsub.f32 %v1021_v24, %v1024_v41  ;;  %v1974_v24 = vld [vmem:[%s511_s28] sm:$0xff]  }
 0x5b6   : > { %1809 = vmatpush3.bf16.msra.mxu1 %v1974_v24 }
 0x5b7   : > { %v1026_v43 = vmul.f32 1.442695, %v1025_v42  ;;  %1810 = vmatprep.subr.bf16.mxu1 %v2398_v5 }
 0x5b9   : > { %1988 = vpow2.f32 %v1026_v43 }
 0x5ba   : > { %1811 = vmatpush3.bf16.msra.mxu1 %v1975_v25 }
 0x5bb   : > { %v1987_v44 = vpop.eup %1986  ;;  %1824 = vmatprep.subr.bf16.mxu1 %v2398_v5 }
 0x5bc   : > { %v916_v45 = vsel %vm697_vm4, %v1987_v44, 0.0  ;;  %v1136_v49 = vpop.xlane.xlu1 %1135 }
 0x5bd   : > { %917 = vadd.xlane.f32.xlu1 %v916_v45  ;;  %v1137_v50 = vsub.f32 %v1133_v31, %v1136_v49  ;;  %v1977_v49 = vld [vmem:[%s528_s14 + $0x8] sm:$0xff]  }
 0x5bf   : > { %v1138_v51 = vmul.f32 1.442695, %v1137_v50 }
 0x5c1   : > { %1990 = vpow2.f32 %v1138_v51 }
 0x5c3   : > { %v1989_v46 = vpop.eup %1988 }
 0x5c4   : > { %v1028_v47 = vsel %vm697_vm4, %v1989_v46, 0.0 }
 0x5c5   : > { %1029 = vadd.xlane.f32.xlu0 %v1028_v47 }
 0x5cb   : > { %v1991_v52 = vpop.eup %1990 }
 0x5cc   : > { %v1140_v53 = vsel %vm697_vm4, %v1991_v52, 0.0 }
 0x5ce   : > { %922 = vrot.lane.b32.xlu1 %v743_v48, %s2413_s22 }
 0x5db   : > { %808 = vrot.lane.b32.xlu0 %v743_v48, %s2414_s25 }
 0x5df   : > { %1146 = vrot.lane.b32.xlu0 %v743_v48, %s2415_s13 }
 0x5f2   : > { %1141 = vadd.xlane.f32.xlu1 %v1140_v53  ;;  %v1702_v53 = vld [vmem:[%s519_s7] ss:$0 sm:$0xff] }
 0x603   : > { %1034 = vrot.lane.b32.xlu1 %v743_v48, %s2416_s17  ;;  %v1976_v48 = vld [vmem:[%s528_s14] sm:$0xff]  }
 0x641   : > { %v803_v54 = vpop.xlane.xlu0 %802 }
 0x642   : > { %1992 = vrcp.f32 %v803_v54 }
 0x64a   : > { %v918_v16 = vpop.xlane.xlu1 %917 }
 0x64b   : > { %1994 = vrcp.f32 %v918_v16 }
 0x64c   : > { %v1993_v55 = vpop.eup %1992 }
 0x64d   : > { %v805_v57 = vmul.f32 %v1993_v55, %v1985_v39 }
 0x64e   : > { %v923_v60 = vpop.permute.xlu1 %922 }
 0x64f   : > { %v806_v61 = vpack.c.bf16 %v805_v57, %v805_v57  ;;  %v928_v63 = vsel %vm813_vm11, %v923_v60, 0  ;;  %v1979_v57 = vld [vmem:[%s2882_s16 + $0x8] sm:$0xff]  }
 0x652   : > { %v1030_v56 = vpop.xlane.xlu0 %1029 }
 0x653   : > { %1996 = vrcp.f32 %v1030_v56  ;;  %v1978_v56 = vld [vmem:[%s2882_s16] sm:$0xff]  }
 0x655   : > { %v1995_v62 = vpop.eup %1994 }
 0x656   : > { %v809_v58 = vpop.permute.xlu0 %808  ;;  %v920_v0 = vmul.f32 %v1995_v62, %v1987_v44 }
 0x657   : > { %v815_v59 = vsel %vm813_vm11, %v809_v58, 0  ;;  %v1980_v58 = vld [vmem:[%s2882_s16 + $0x10] sm:$0xff]  }
 0x658   : > { %1767 = vmatpush3.bf16.msra.mxu0 %v815_v59  ;;  %v921_v2 = vpack.c.bf16 %v920_v0, %v920_v0  ;;  %v1981_v59 = vld [vmem:[%s2882_s16 + $0x18] sm:$0xff]  }
 0x659   : > { %1778 = vmatprep.subr.bf16.mxu0 %v2398_v5 }
 0x65a   : > { %v1147_v9 = vpop.permute.xlu0 %1146 }
 0x65b   : > { %1769 = vmatmul.mubr.msk.bf16.vlgmr.msra.gmra.mrb[4].mxu0 %vm697_vm4, %v806_v61  ;;  %v1152_v11 = vsel %vm813_vm11, %v1147_v9, 0 }
 0x65c   : > { %1779 = vmatpush3.bf16.msra.mxu0 %v928_v63  ;;  %1780 = vmatprep.mubr.msk.bf16.mxu0 %vm2399_vm2, %v2398_v5 }
 0x65d   : > { %1790 = vmatprep.subr.bf16.mxu0 %v2398_v5  ;;  %v1997_v3 = vpop.eup %1996 }
 0x65e   : > { %v1032_v6 = vmul.f32 %v1997_v3, %v1989_v46 }
 0x660   : > { %v1033_v10 = vpack.c.bf16 %v1032_v6, %v1032_v6 }
 0x663   : > { %1781 = vmatmul.mubr.msk.bf16.vlgmr.msra.gmra.mrb[8].mxu0 %vm697_vm4, %v921_v2 }
 0x664   : > { %1792 = vmatprep.mubr.msk.bf16.mxu0 %vm2399_vm2, %v2398_v5 }
 0x67f   : > { %v1142_v4 = vpop.xlane.xlu1 %1141 }
 0x680   : > { %1998 = vrcp.f32 %v1142_v4 }
 0x683   : > { %v1035_v7 = vpop.permute.xlu1 %1034 }
 0x684   : > { %v1040_v8 = vsel %vm813_vm11, %v1035_v7, 0 }
 0x685   : > { %1791 = vmatpush3.bf16.msra.mxu0 %v1040_v8 }
 0x686   : > { %1802 = vmatprep.subr.bf16.mxu0 %v2398_v5 }
 0x688   : > { %1793 = vmatmul.mubr.msk.bf16.vlgmr.msra.gmra.mrb[12].mxu0 %vm697_vm4, %v1033_v10 }
 0x689   : > { %1803 = vmatpush3.bf16.msra.mxu0 %v1152_v11  ;;  %1804 = vmatprep.mubr.msk.bf16.mxu0 %vm2399_vm2, %v2398_v5 }
 0x68a   : > { %v1999_v12 = vpop.eup %1998  ;;  %1816 = vmatprep.subr.bf16.mxu0 %v2398_v5 }
 0x68b   : > { %v1144_v13 = vmul.f32 %v1999_v12, %v1991_v52 }
 0x68d   : > { %v1145_v14 = vpack.c.bf16 %v1144_v13, %v1144_v13 }
 0x690   : > { %1805 = vmatmul.mubr.msk.bf16.vlgmr.msra.gmra.mrb[16].mxu0 %vm697_vm4, %v1145_v14 }
 0x691   : > { %1820 = vmatprep.mubr.msk.bf16.mxu0 %vm2399_vm2, %v2398_v5  ;;  %1817 = vmatpush3.bf16.msra.mxu0 %v1976_v48 }
 0x692   : > { %1818 = vmatprep.subr.bf16.mxu0 %v2398_v5 }
 0x695   : > { %1819 = vmatpush3.bf16.msra.mxu0 %v1977_v49 }
 0x72e   : > { %v851_v15 = vpop.f32.mrb[4].mxu0 }
 0x72f   : > { %v1770_v17 = vpop.f32.mrb[5].mxu0 }
 0x730   : > { %v854_v18 = vpop.f32.mrb[6].mxu0 }
 0x731   : > { %v1771_v19 = vpop.f32.mrb[7].mxu0 }
 0x736   : > { %v964_v20 = vpop.f32.mrb[8].mxu0 }
 0x737   : > { %1195 = vrot.lane.b32.xlu1 %v964_v20, %s2417_s20  ;;  %v1782_v21 = vpop.f32.mrb[9].mxu0 }
 0x738   : > { %v967_v22 = vpop.f32.mrb[10].mxu0  ;;  %v1713_v21 = vld [vmem:[#allocation18] ss:$0 sm:$0xff] (!%p1712_p1) }
 0x739   : > { %v1783_v23 = vpop.f32.mrb[11].mxu0 }
 0x75b   : > { %v1076_v26 = vpop.f32.mrb[12].mxu0 }
 0x75c   : > { %1199 = vrot.lane.b32.xlu0 %v1076_v26, %s2418_s8  ;;  %v1794_v27 = vpop.f32.mrb[13].mxu0 }
 0x75d   : > { %v1079_v28 = vpop.f32.mrb[14].mxu0 }
 0x75e   : > { %v1795_v29 = vpop.f32.mrb[15].mxu0 }
 0x763   : > { %v1188_v30 = vpop.f32.mrb[16].mxu0 }
 0x764   : > { %1203 = vrot.lane.b32.xlu1 %v1188_v30, %s2419_s10  ;;  %v1806_v31 = vpop.f32.mrb[17].mxu0 }
 0x765   : > { %v1191_v32 = vpop.f32.mrb[18].mxu0 }
 0x766   : > { %v1807_v33 = vpop.f32.mrb[19].mxu0 }
 0x7a9   : > { %v1196_v34 = vpop.permute.xlu1 %1195 }
 0x7aa   : > { %v1206_v36 = vsel %vm697_vm4, %v851_v15, %v1196_v34 }
 0x7ce   : > { %v1200_v35 = vpop.permute.xlu0 %1199 }
 0x7cf   : > { %v1207_v37 = vsel %vm701_vm6, %v1206_v36, %v1200_v35 }
 0x7d6   : > { %v1204_v38 = vpop.permute.xlu1 %1203 }
 0x7d7   : > { %v1208_v39 = vsel %vm705_vm8, %v1207_v37, %v1204_v38 }
 0x7d8   : > { %v1209_v40 = vpack.c.bf16 %v1208_v39, %v1208_v39 }
 0x7da   : > { %1813 = vmatmul.mubr.msk.bf16.vlgmr.msra.gmra.mrb[16].mxu1 %vm607_vm1, %v1209_v40 }
 0x7db   : > { %1832 = vmatprep.mubr.msk.bf16.mxu1 %vm2399_vm2, %v2398_v5  ;;  %1825 = vmatpush3.bf16.msra.mxu1 %v1978_v56 }
 0x7dc   : > { %1826 = vmatprep.subr.bf16.mxu1 %v2398_v5 }
 0x7df   : > { %1827 = vmatpush3.bf16.msra.mxu1 %v1979_v57 }
 0x7e0   : > { %1828 = vmatprep.subr.bf16.mxu1 %v2398_v5 }
 0x7e3   : > { %1829 = vmatpush3.bf16.msra.mxu1 %v1980_v58 }
 0x7e4   : > { %1830 = vmatprep.subr.bf16.mxu1 %v2398_v5 }
 0x7e7   : > { %1831 = vmatpush3.bf16.msra.mxu1 %v1981_v59 }
 0x8ad   : > { %v1263_v41 = vpop.f32.mrb[16].mxu1 }
 0x8ae   : > { %v1269_v42 = vadd.f32 %v1263_v41, %v2890_v1  ;;  %v1814_v43 = vpop.f32.mrb[17].mxu1 }
 0x8af   : > { %v1266_v44 = vpop.f32.mrb[18].mxu1 }
 0x8b0   : > { %v1815_v45 = vpop.f32.mrb[19].mxu1  ;;  %v1271_v46 = vmul.f32 %v1269_v42, %v1269_v42 }
 0x8b2   : > { %v1272_v47 = vsel %vm607_vm1, %v1271_v46, 0.0 }
 0x8b3   : > { %1273 = vadd.xlane.f32.xlu0 %v1272_v47 }
 0x940   : > { %v1274_v1 = vpop.xlane.xlu0 %1273 }
 0x941   : > { %v1275_v50 = vmul.f32 0.03125, %v1274_v1 }
 0x943   : > { %v1276_v51 = vadd.f32 1e-06, %v1275_v50 }
 0x945   : > { %2000 = vrsqrt.f32 %v1276_v51 }
 0x94f   : > { %v2001_v52 = vpop.eup %2000 }
 0x950   : > { %v1278_v54 = vmul.f32 %v2001_v52, %v1269_v42 }
 0x952   : > { %v1285_v16 = vmul.f32 %v1702_v53, %v1278_v54 }
 0x954   : > { %v1286_v55 = vpack.c.bf16 %v1285_v16, %v1285_v16 }
 0x956   : > { %1821 = vmatmul.mubr.msk.bf16.vlgmr.msra.gmra.mrb[20].mxu0 %vm607_vm1, %v1286_v55 }
 0xa29   : > { %v1340_v60 = vpop.f32.mrb[20].mxu0 }
 0xa2a   : > { %1354 = vrot.lane.b32.xlu1 %v1340_v60, %s2414_s25  ;;  %v1822_v61 = vpop.f32.mrb[21].mxu0  ;;  %v1706_v0 = vmul.f32 -1.442695, %v1340_v60 }
 0xa2b   : > { %v1343_v62 = vpop.f32.mrb[22].mxu0 }
 0xa2c   : > { %v1823_v63 = vpop.f32.mrb[23].mxu0  ;;  %2002 = vpow2.f32 %v1706_v0 }
 0xa36   : > { %v2003_v2 = vpop.eup %2002 }
 0xa37   : > { %v1349_v3 = vadd.f32 1.0, %v2003_v2 }
 0xa39   : > { %2004 = vrcp.f32 %v1349_v3 }
 0xa43   : > { %v2005_v4 = vpop.eup %2004 }
 0xa44   : > { %v1352_v6 = vmul.f32 %v2005_v4, %v1340_v60 }
 0xa9c   : > { %v1355_v7 = vpop.permute.xlu1 %1354 }
 0xa9d   : > { %v1357_v8 = vmul.f32 %v1355_v7, %v1352_v6 }
 0xa9f   : > { %v1358_v9 = vpack.c.bf16 %v1357_v8, %v1357_v8 }
 0xaa1   : > { %1833 = vmatmul.mubr.msk.bf16.vlgmr.msra.gmra.mrb[20].mxu1 %vm1391_vm12, %v1358_v9 }
 0xb71   : > { %1440 = sbr.rel (%p1712_p1) target bundleno = 3100 (0xc1c), region = 108 }
 0xb74   : > { %v1429_v5 = vpop.f32.mrb[20].mxu1 }
 0xb75   : > { %v1435_v10 = vadd.f32 %v1429_v5, %v1269_v42  ;;  %v1834_v11 = vpop.f32.mrb[21].mxu1 }
 0xb76   : > { %v1432_v12 = vpop.f32.mrb[22].mxu1 }
 0xb77   : > { %1436 = vst.msk [vmem:[#allocation2] sm:$0xff] %vm607_vm1, %v1435_v10  ;;  %v1835_v13 = vpop.f32.mrb[23].mxu1  ;;  %v1442_v14 = vmul.f32 (!%p1712_p1), %v1435_v10, %v1435_v10 }
 0xb79   : > { %v1443_v15 = vsel %vm607_vm1, %v1442_v14, 0.0 }
 0xb7a   : > { %1444 = vadd.xlane.f32.xlu0 %v1443_v15 }
 0xc07   : > { %v1445_v17 = vpop.xlane.xlu0 %1444 }
 0xc08   : > { %v1446_v18 = vmul.f32 0.03125, %v1445_v17 }
 0xc0a   : > { %v1447_v19 = vadd.f32 1e-06, %v1446_v18 }
 0xc0c   : > { %2006 = vrsqrt.f32 %v1447_v19 }
 0xc16   : > { %v2007_v20 = vpop.eup %2006 }
 0xc17   : > { %v1449_v22 = vmul.f32 %v2007_v20, %v1435_v10 }
 0xc19   : > { %v1456_v23 = vmul.f32 %v1713_v21, %v1449_v22 }
 0xc1b   : > { %1457 = vst.msk [vmem:[#allocation20] sm:$0xff] %vm607_vm1, %v1456_v23 }
 0xc1c PF: > { %s3136_s24 = sld [smem:[#allocation30_spill]]  ;;  %s2420_s28 = smov [#allocation20]  }
 0xc1d   : > { %s1465_s7 = sshll.u32 %s2420_s28, 4  ;;  %s1466_s7 = int_to_ptr.vmem [resolvable:$true] %s1465_s7 }
 0xc1e   : > { %s2300_s14 = scalar_lea.vmem %s1466_s7, 128  ;;  %p2307_p13 = scmp.lt.s32.totalorder %s1466_s7, %s1466_s7 }
 0xc1f   : > { %p2301_p12 = scmp.ne.s32.totalorder %s1466_s7, %s2300_s14  ;;  %p2308_p2 = scmp.lt.s32.totalorder %s2300_s14, %s2300_s14 }
 0xc21   : > { %p2309_p11 = por %p2308_p2, %p2307_p13 }
 0xc22   : > { %p1909_p7 = scmp.eq.s32.totalorder %s3136_s24, 1 }
 0xc24   : > { %p2302_p5 = pnand %p2301_p12, %p1909_p7 }
 0xc26   : > { %p2303_p9 = pneg %p2302_p5 }
 0xc28   : > { %p2310_p0 = pnand %p2309_p11, %p2303_p9 }
 0xc2a   : > { %2313 = shalt.err (!%p2310_p0)
}
 0xc2b   : > { %s3137_s11 = sld [smem:[#allocation40_spill]] }
 0xc31   : > { %s2314_s1 = scalar_lea.hbm %s3137_s11, 128 }
 0xc32   : > { %p2315_p3 = scmp.ne.s32.totalorder %s3137_s11, %s2314_s1  ;;  %p2320_p8 = scmp.lt.u32.totalorder %s2314_s1, %s3137_s11 }
 0xc34   : > { %p2316_p4 = pnand %p2315_p3, %p1909_p7 }
 0xc36   : > { %p2317_p6 = pneg %p2316_p4 }
 0xc38   : > { %p2322_p10 = pnand %p2320_p8, %p2317_p6 }
 0xc3a   : > { %2325 = shalt.err (!%p2322_p10)
}
 0xc3b   : > { %1865 = dma.vmem_to_hbm [thread:$0]  (%p1909_p7), %s1466_s7, 128, %s3137_s11, [#allocation5]  }
 0xc3c   : > { %2367 = dma.done.wait (%p1909_p7), [#allocation5], 128  }
 0xc3d   : > { %2369 = vsyncadd (%p1909_p7), [#allocation5], 4294967168 }
 0xc3e PF: > { %s3138_s16 = sld [smem:[#allocation33_spill]]  ;;  %s3139_s13 = sld [smem:[#allocation28_spill]] }
 0xc3f   : > { %s3140_s14 = sld [smem:[#allocation29_spill]]  ;;  %s3141_s15 = sld [smem:[#allocation34_spill]] }
 0xc44   : > { %p30_p1 = scmp.ge.s32.totalorder %s3138_s16, 4  }
 0xc46   :  { %32 = sbr.rel (!%p30_p1) target bundleno = 18 (0x12), region = 181 }
 0xc4d   :  { %1478 = vsyncpa [#allocation4], 1 }
 0xc4e   :  { %1480 = vsyncpa [#allocation4 + $0x1], 1 }
 0xc4f   :  { %1481 = vsyncpa [#allocation7], 1 }
 0xc50   :  { %1482 = vsyncpa [#allocation10], 1 }
 0xc51   :  { %1484 = vsyncpa [#allocation10 + $0x1], 1 }
 0xc52   :  { %1485 = vsyncpa [#allocation13], 1 }
 0xc53   :  { %1487 = vsyncpa [#allocation13 + $0x1], 1 }
 0xc54   :  { %1488 = vsyncpa [#allocation16], 1 }
 0xc55   :  { %1490 = vsyncpa [#allocation16 + $0x1], 1 }
 0xc56   :  { %1491 = vsyncpa [#allocation19], 1 }
 0xc57   :  { %1492 = vsyncpa [#allocation5], 1 }
 0xc58   :  { %1494 = vsyncpa [#allocation5 + $0x1], 1 }

</bundles_post_ra>
